<compile_context>
chip_gen: v7x
topology: tpu7x:2x2x1
jax: 0.10.0
libtpu: 0.0.40
codegen_flags: <defaults>
</compile_context>

<pallas_src>
import functools

import jax
import jax.numpy as jnp
from jax import lax
from jax.experimental import pallas as pl
from jax.experimental.pallas import tpu as pltpu


def _silu(y):
    # y * sigmoid(y); reciprocal routed to the EUP (approx) so the epilogue stays
    # off the VALU slots.  Use approx=False if bit-parity with torch is required.
    return y * pl.reciprocal(1.0 + jnp.exp(-y), approx=True)


def _adown_kernel(x_ref, w1_ref, b1_ref, w2_ref, b2_ref, o_ref,
                  patch_ref, mx_ref, *, Ho, Wo, Ch, Cout):
    """Whole ADown forward for one image.

    x_ref    : (1, 4, Ho, Wo, 2*Ch) bf16  2x2 phase-split raw input (phase k = 2*pr+pc)
    w1_ref   : (Cout, 9*Ch) bf16          folded 3x3 conv+BN weight, pre-scaled by 1/4
    b1_ref   : (Cout, 1)    f32
    w2_ref   : (Cout, Ch)   bf16          folded 1x1 conv+BN weight, pre-scaled by 1/4
    b2_ref   : (Cout, 1)    f32
    o_ref    : (1, 2*Cout, Ho*Wo)         NCHW output, spatial flattened (lane-dense)
    patch_ref: (Ho, Wo, 9*Ch) f32 VMEM    scratch: fused-conv patch tensor
    mx_ref   : (Ho, Wo, Ch)   f32 VMEM    scratch: 3x3/stride-2 max-pool result
    """
    f32 = jnp.float32

    # ---- 2x2 / stride-1 avg pool (x4; the 1/4 is folded into the conv weights),
    # computed per output-parity phase so that every later stride-2 window access
    # is a unit-offset slice.  Widened to f32 on load (no bf16 VALU on v5e).
    # Both channel halves are pooled in one pass and split afterwards.
    x00 = x_ref[0, 0].astype(f32)      # rows 2i  , cols 2j
    x01 = x_ref[0, 1].astype(f32)      # rows 2i  , cols 2j+1
    x10 = x_ref[0, 2].astype(f32)      # rows 2i+1, cols 2j
    x11 = x_ref[0, 3].astype(f32)      # rows 2i+1, cols 2j+1
    p00 = x00 + x01 + x10 + x11                                   # (Ho,   Wo,   2Ch)
    p10 = x10[:-1] + x11[:-1] + x00[1:] + x01[1:]                 # (Ho-1, Wo,   2Ch)
    p01 = x01[:, :-1] + x11[:, :-1] + x00[:, 1:] + x10[:, 1:]     # (Ho,   Wo-1, 2Ch)
    p11 = (x11[:-1, :-1] + x01[1:, :-1]
           + x10[:-1, 1:] + x00[1:, 1:])                          # (Ho-1, Wo-1, 2Ch)

    # kernel-tap offset (0/1/2) -> (source row/col parity, dest start, dest length)
    # for a 3x3 / stride-2 / pad-1 window over the avg-pooled (phase-split) image.
    rsel = {0: (1, 1, Ho - 1), 1: (0, 0, Ho), 2: (1, 0, Ho - 1)}
    csel = {0: (1, 1, Wo - 1), 1: (0, 0, Wo), 2: (1, 0, Wo - 1)}

    # ---- branch 1: avg-pool -> 3x3 stride-2 conv(+BN) -> SiLU ------------------
    # torch .chunk(2, 1): first channel half.
    ph1 = {(0, 0): p00[..., :Ch], (1, 0): p10[..., :Ch],
           (0, 1): p01[..., :Ch], (1, 1): p11[..., :Ch]}

    # Zero only the four 1-wide border strips: the centre tap covers the full
    # extent, and every position left unwritten by an off-centre tap (the conv's
    # zero padding) lies inside these strips.  (No full-buffer memset.)
    zrow = jnp.zeros((1, Wo, 9 * Ch), f32)
    zcol = jnp.zeros((Ho, 1, 9 * Ch), f32)
    patch_ref[0:1] = zrow
    patch_ref[Ho - 1:Ho] = zrow
    patch_ref[:, 0:1] = zcol
    patch_ref[:, Wo - 1:Wo] = zcol
    # 9 cheap sub-window stores assemble the (Ho, Wo, 9*Ch) patch tensor.
    for dh in range(3):
        rp, r0, rl = rsel[dh]
        for dw in range(3):
            cp, c0, cl = csel[dw]
            t = dh * 3 + dw
            patch_ref[r0:r0 + rl, c0:c0 + cl, t * Ch:(t + 1) * Ch] = ph1[(rp, cp)]

    # Single K = 9*Ch MXU matmul.  Contracting the last dims of both operands
    # (flash-attention style "trans_b") lowers to a native transposed weight push
    # on the MXU — no XLU transpose of the patch tensor — and the (Cout, Ho*Wo)
    # result gives a lane-dense store that is already NCHW.
    patches = patch_ref[...].reshape(Ho * Wo, 9 * Ch).astype(jnp.bfloat16)
    y1 = lax.dot_general(w1_ref[...], patches,
                         dimension_numbers=(((1,), (1,)), ((), ())),
                         preferred_element_type=jnp.float32)
    y1 = _silu(y1 + b1_ref[...])
    o_ref[0, :Cout, :] = y1.astype(o_ref.dtype)

    # ---- branch 2: avg-pool -> 3x3 stride-2 max-pool (-inf pad, i.e. out-of-range
    # taps ignored) -> 1x1 conv(+BN) -> SiLU.  Second channel half.
    # Assembled as 9 disjoint *pure* stores (no read-modify-write passes).
    q00, q01 = p00[..., Ch:], p01[..., Ch:]
    q10, q11 = p10[..., Ch:], p11[..., Ch:]

    def store_rows(cm0, cm1, c0, cl):
        # cm0: (Ho,   cl, Ch) column-max over this col range for even avg rows (2i)
        # cm1: (Ho-1, cl, Ch) column-max over this col range for odd  avg rows (2i+-1)
        mx_ref[0:1, c0:c0 + cl] = jnp.maximum(cm0[:1], cm1[:1])
        if Ho > 2:
            mx_ref[1:Ho - 1, c0:c0 + cl] = jnp.maximum(
                jnp.maximum(cm1[:Ho - 2], cm0[1:Ho - 1]), cm1[1:Ho - 1])
        mx_ref[Ho - 1:Ho, c0:c0 + cl] = jnp.maximum(cm1[Ho - 2:Ho - 1],
                                                    cm0[Ho - 1:Ho])

    # left output column (j = 0): avg cols {0, 1}
    store_rows(jnp.maximum(q00[:, :1], q01[:, :1]),
               jnp.maximum(q10[:, :1], q11[:, :1]), 0, 1)
    # interior output columns (1 <= j <= Wo-2): avg cols {2j-1, 2j, 2j+1}
    if Wo > 2:
        store_rows(
            jnp.maximum(jnp.maximum(q01[:, :Wo - 2], q00[:, 1:Wo - 1]),
                        q01[:, 1:Wo - 1]),
            jnp.maximum(jnp.maximum(q11[:, :Wo - 2], q10[:, 1:Wo - 1]),
                        q11[:, 1:Wo - 1]),
            1, Wo - 2)
    # right output column (j = Wo-1): avg cols {2(Wo-1)-1, 2(Wo-1)}
    store_rows(jnp.maximum(q01[:, Wo - 2:Wo - 1], q00[:, Wo - 1:Wo]),
               jnp.maximum(q11[:, Wo - 2:Wo - 1], q10[:, Wo - 1:Wo]), Wo - 1, 1)

    m2 = mx_ref[...].reshape(Ho * Wo, Ch).astype(jnp.bfloat16)
    y2 = lax.dot_general(w2_ref[...], m2,
                         dimension_numbers=(((1,), (1,)), ((), ())),
                         preferred_element_type=jnp.float32)
    y2 = _silu(y2 + b2_ref[...])

    # ---- cat([cv1(x1), cv2(maxpool(x2))], channel) -> (2*Cout, Ho*Wo) ----------
    o_ref[0, Cout:, :] = y2.astype(o_ref.dtype)


def adown_forward(x_nchw, params):
    """Pallas ADown forward.  Input/output NCHW (PyTorch convention)."""
    N, C1, H, W = x_nchw.shape
    assert C1 % 2 == 0 and H % 2 == 0 and W % 2 == 0 and H >= 4 and W >= 4, (C1, H, W)
    Ch = C1 // 2
    Ho, Wo = H // 2, W // 2
    w1 = params["cv1_w"]                     # (3, 3, Ch, Cout) f32, BN folded
    b1 = params["cv1_b"]                     # (Cout,)
    w2 = params["cv2_w"]                     # (Ch, Cout)
    b2 = params["cv2_b"]
    Cout = w1.shape[-1]

    # Single fused input rearrangement: split both spatial dims into their 2x2
    # phases AND cast to bf16 in the same op, so the rearranged copy is written
    # to HBM (and later DMA'd by the kernel) at half the bytes.  This replaces
    # the NCHW->channels-last transpose we would otherwise pay before the conv.
    xph = (x_nchw.reshape(N, C1, Ho, 2, Wo, 2)
           .transpose(0, 3, 5, 2, 4, 1)
           .reshape(N, 4, Ho, Wo, C1)
           .astype(jnp.bfloat16))

    # Weights in "W . patches^T" orientation, bf16 for the MXU; the avg-pool's
    # 1/4 is folded in here (conv is linear, max-pool is scale-equivariant), so
    # the kernel never multiplies the pooled activations by 0.25.
    w1t = jnp.transpose(0.25 * w1.reshape(9 * Ch, Cout)).astype(jnp.bfloat16)  # (Cout, 9*Ch)
    w2t = jnp.transpose(0.25 * w2).astype(jnp.bfloat16)                        # (Cout, Ch)
    b1c = b1.reshape(Cout, 1).astype(jnp.float32)
    b2c = b2.reshape(Cout, 1).astype(jnp.float32)

    kernel = functools.partial(_adown_kernel, Ho=Ho, Wo=Wo, Ch=Ch, Cout=Cout)

    out = pl.pallas_call(
        kernel,
        out_shape=jax.ShapeDtypeStruct((N, 2 * Cout, Ho * Wo), x_nchw.dtype),
        grid_spec=pltpu.PrefetchScalarGridSpec(
            num_scalar_prefetch=0,
            grid=(N,),
            in_specs=[
                # single phase-split input stream; channel halves sliced in-kernel
                pl.BlockSpec((1, 4, Ho, Wo, C1), lambda n: (n, 0, 0, 0, 0)),
                pl.BlockSpec((Cout, 9 * Ch), lambda n: (0, 0)),
                pl.BlockSpec((Cout, 1), lambda n: (0, 0)),
                pl.BlockSpec((Cout, Ch), lambda n: (0, 0)),
                pl.BlockSpec((Cout, 1), lambda n: (0, 0)),
            ],
            out_specs=pl.BlockSpec((1, 2 * Cout, Ho * Wo), lambda n: (n, 0, 0)),
            scratch_shapes=[
                pltpu.VMEM((Ho, Wo, 9 * Ch), jnp.float32),   # conv patch tensor
                pltpu.VMEM((Ho, Wo, Ch), jnp.float32),       # max-pool result
            ],
        ),
        compiler_params=pltpu.CompilerParams(
            dimension_semantics=("parallel",),
            vmem_limit_bytes=48 * 1024 * 1024,
        ),
    )(xph, w1t, b1c, w2t, b2c)

    return out.reshape(N, 2 * Cout, Ho, Wo)     # free reshape: already NCHW


# -----------------------------------------------------------------------------
# Parameters (Conv2d(bias=False) + BatchNorm2d folded, eval-mode)
# -----------------------------------------------------------------------------
def _fold_conv_bn(key, cin, cout, k):
    kw, kb, kg, km, kv = jax.random.split(key, 5)
    w = jax.random.normal(kw, (k, k, cin, cout), jnp.float32) / (k * k * cin) ** 0.5
    gamma = 1.0 + 0.1 * jax.random.normal(kg, (cout,), jnp.float32)
    beta = 0.1 * jax.random.normal(kb, (cout,), jnp.float32)
    mean = 0.1 * jax.random.normal(km, (cout,), jnp.float32)
    var = jnp.abs(jax.random.normal(kv, (cout,), jnp.float32)) + 1.0
    scale = gamma / jnp.sqrt(var + 1e-5)
    return w * scale, beta - mean * scale


def init_adown_params(key, c1, c2):
    c = c2 // 2
    k1, k2 = jax.random.split(key)
    w1, b1 = _fold_conv_bn(k1, c1 // 2, c, 3)            # cv1: 3x3, stride 2, pad 1
    w2, b2 = _fold_conv_bn(k2, c1 // 2, c, 1)            # cv2: 1x1, stride 1
    return {"cv1_w": w1, "cv1_b": b1,
            "cv2_w": w2.reshape(c1 // 2, c), "cv2_b": b2}


# -----------------------------------------------------------------------------
# Pure-JAX (f32) reference, mirroring torch ADown eval-mode semantics
# -----------------------------------------------------------------------------
def adown_ref(x_nchw, params):
    x = jnp.transpose(x_nchw, (0, 2, 3, 1))                       # NHWC
    ap = 0.25 * (x[:, :-1, :-1] + x[:, 1:, :-1]
                 + x[:, :-1, 1:] + x[:, 1:, 1:])                  # avg_pool2d(2,1,0)
    ch = x.shape[-1] // 2
    a1, a2 = ap[..., :ch], ap[..., ch:]                           # chunk(2, channel)
    y1 = lax.conv_general_dilated(
        a1, params["cv1_w"], window_strides=(2, 2), padding=((1, 1), (1, 1)),
        dimension_numbers=("NHWC", "HWIO", "NHWC"))
    y1 = y1 + params["cv1_b"]
    y1 = y1 * jax.nn.sigmoid(y1)                                  # SiLU
    m2 = lax.reduce_window(a2, -jnp.inf, lax.max,
                           (1, 3, 3, 1), (1, 2, 2, 1),
                           ((0, 0), (1, 1), (1, 1), (0, 0)))      # max_pool2d(3,2,1)
    y2 = m2 @ params["cv2_w"] + params["cv2_b"]
    y2 = y2 * jax.nn.sigmoid(y2)
    out = jnp.concatenate([y1, y2], axis=-1)
    return jnp.transpose(out, (0, 3, 1, 2))                       # NCHW


# -----------------------------------------------------------------------------
if __name__ == "__main__":
    key = jax.random.PRNGKey(0)
    kx, kp = jax.random.split(key)

    N, C1, C2, H, W = 2, 8, 16, 16, 16
    x = jax.random.normal(kx, (N, C1, H, W), jnp.float32)         # NCHW like PyTorch
    params = init_adown_params(kp, C1, C2)

    fwd = jax.jit(adown_forward)
    out = jax.block_until_ready(fwd(x, params))
    ref = jax.block_until_ready(adown_ref(x, params))

    assert out.shape == (N, C2, H // 2, W // 2), out.shape
    max_err = float(jnp.max(jnp.abs(out - ref)))
    # bf16 activations/weights at the HBM/MXU boundary (f32 accumulation).
    assert max_err < 5e-2, f"mismatch vs reference: {max_err}"

    print("KERNEL_OK")
</pallas_src>

<mosaic_0001>
module attributes {stable_mosaic.version = 11 : i64} {
  func.func @_adown_kernel(%arg0: i32, %arg1: memref<1x4x8x8x8xbf16, #tpu.memory_space<vmem>>, %arg2: memref<8x36xbf16, #tpu.memory_space<vmem>>, %arg3: memref<8x1xf32, #tpu.memory_space<vmem>>, %arg4: memref<8x4xbf16, #tpu.memory_space<vmem>>, %arg5: memref<8x1xf32, #tpu.memory_space<vmem>>, %arg6: memref<1x16x64xf32, #tpu.memory_space<vmem>>, %arg7: memref<8x8x36xf32, #tpu.memory_space<vmem>>, %arg8: memref<8x8x4xf32, #tpu.memory_space<vmem>>) attributes {dimension_semantics = [#tpu.dimension_semantics<parallel>], iteration_bounds = array<i64: 2>, scalar_prefetch = 0 : i64, scratch_operands = 2 : i64, tpu.core_type = #tpu.core_type<tc>, window_params = [{transform_indices = @transform_0, window_bounds = array<i64: 1, 4, 8, 8, 8>}, {pipeline_mode = #tpu.pipeline_mode<synchronous>, transform_indices = @transform_1, window_bounds = array<i64: 8, 36>}, {pipeline_mode = #tpu.pipeline_mode<synchronous>, transform_indices = @transform_2, window_bounds = array<i64: 8, 1>}, {pipeline_mode = #tpu.pipeline_mode<synchronous>, transform_indices = @transform_3, window_bounds = array<i64: 8, 4>}, {pipeline_mode = #tpu.pipeline_mode<synchronous>, transform_indices = @transform_4, window_bounds = array<i64: 8, 1>}, {transform_indices = @transform_5, window_bounds = array<i64: 1, 16, 64>}]} {
    %c0 = arith.constant 0 : index
    %c0_0 = arith.constant 0 : index
    %c0_1 = arith.constant 0 : index
    %c0_2 = arith.constant 0 : index
    %c0_3 = arith.constant 0 : index
    %0 = vector.load %arg1[%c0, %c0_0, %c0_1, %c0_2, %c0_3] : memref<1x4x8x8x8xbf16, #tpu.memory_space<vmem>>, vector<1x1x8x8x8xbf16>
    %1 = vector.shape_cast %0 : vector<1x1x8x8x8xbf16> to vector<8x8x8xbf16>
    %2 = arith.extf %1 : vector<8x8x8xbf16> to vector<8x8x8xf32>
    %c0_4 = arith.constant 0 : index
    %c1 = arith.constant 1 : index
    %c0_5 = arith.constant 0 : index
    %c0_6 = arith.constant 0 : index
    %c0_7 = arith.constant 0 : index
    %3 = vector.load %arg1[%c0_4, %c1, %c0_5, %c0_6, %c0_7] : memref<1x4x8x8x8xbf16, #tpu.memory_space<vmem>>, vector<1x1x8x8x8xbf16>
    %4 = vector.shape_cast %3 : vector<1x1x8x8x8xbf16> to vector<8x8x8xbf16>
    %5 = arith.extf %4 : vector<8x8x8xbf16> to vector<8x8x8xf32>
    %c0_8 = arith.constant 0 : index
    %c2 = arith.constant 2 : index
    %c0_9 = arith.constant 0 : index
    %c0_10 = arith.constant 0 : index
    %c0_11 = arith.constant 0 : index
    %6 = vector.load %arg1[%c0_8, %c2, %c0_9, %c0_10, %c0_11] : memref<1x4x8x8x8xbf16, #tpu.memory_space<vmem>>, vector<1x1x8x8x8xbf16>
    %7 = vector.shape_cast %6 : vector<1x1x8x8x8xbf16> to vector<8x8x8xbf16>
    %8 = arith.extf %7 : vector<8x8x8xbf16> to vector<8x8x8xf32>
    %c0_12 = arith.constant 0 : index
    %c3 = arith.constant 3 : index
    %c0_13 = arith.constant 0 : index
    %c0_14 = arith.constant 0 : index
    %c0_15 = arith.constant 0 : index
    %9 = vector.load %arg1[%c0_12, %c3, %c0_13, %c0_14, %c0_15] : memref<1x4x8x8x8xbf16, #tpu.memory_space<vmem>>, vector<1x1x8x8x8xbf16>
    %10 = vector.shape_cast %9 : vector<1x1x8x8x8xbf16> to vector<8x8x8xbf16>
    %11 = arith.extf %10 : vector<8x8x8xbf16> to vector<8x8x8xf32>
    %12 = arith.addf %2, %5 : vector<8x8x8xf32>
    %13 = arith.addf %12, %8 : vector<8x8x8xf32>
    %14 = arith.addf %13, %11 : vector<8x8x8xf32>
    %15 = vector.extract_strided_slice %8 {offsets = [0, 0, 0], sizes = [7, 8, 8], strides = [1, 1, 1]} : vector<8x8x8xf32> to vector<7x8x8xf32>
    %16 = vector.extract_strided_slice %11 {offsets = [0, 0, 0], sizes = [7, 8, 8], strides = [1, 1, 1]} : vector<8x8x8xf32> to vector<7x8x8xf32>
    %17 = arith.addf %15, %16 : vector<7x8x8xf32>
    %18 = vector.extract_strided_slice %2 {offsets = [1, 0, 0], sizes = [7, 8, 8], strides = [1, 1, 1]} : vector<8x8x8xf32> to vector<7x8x8xf32>
    %19 = arith.addf %17, %18 : vector<7x8x8xf32>
    %20 = vector.extract_strided_slice %5 {offsets = [1, 0, 0], sizes = [7, 8, 8], strides = [1, 1, 1]} : vector<8x8x8xf32> to vector<7x8x8xf32>
    %21 = arith.addf %19, %20 : vector<7x8x8xf32>
    %22 = vector.extract_strided_slice %5 {offsets = [0, 0, 0], sizes = [8, 7, 8], strides = [1, 1, 1]} : vector<8x8x8xf32> to vector<8x7x8xf32>
    %23 = vector.extract_strided_slice %11 {offsets = [0, 0, 0], sizes = [8, 7, 8], strides = [1, 1, 1]} : vector<8x8x8xf32> to vector<8x7x8xf32>
    %24 = arith.addf %22, %23 : vector<8x7x8xf32>
    %25 = vector.extract_strided_slice %2 {offsets = [0, 1, 0], sizes = [8, 7, 8], strides = [1, 1, 1]} : vector<8x8x8xf32> to vector<8x7x8xf32>
    %26 = arith.addf %24, %25 : vector<8x7x8xf32>
    %27 = vector.extract_strided_slice %8 {offsets = [0, 1, 0], sizes = [8, 7, 8], strides = [1, 1, 1]} : vector<8x8x8xf32> to vector<8x7x8xf32>
    %28 = arith.addf %26, %27 : vector<8x7x8xf32>
    %29 = vector.extract_strided_slice %11 {offsets = [0, 0, 0], sizes = [7, 7, 8], strides = [1, 1, 1]} : vector<8x8x8xf32> to vector<7x7x8xf32>
    %30 = vector.extract_strided_slice %5 {offsets = [1, 0, 0], sizes = [7, 7, 8], strides = [1, 1, 1]} : vector<8x8x8xf32> to vector<7x7x8xf32>
    %31 = arith.addf %29, %30 : vector<7x7x8xf32>
    %32 = vector.extract_strided_slice %8 {offsets = [0, 1, 0], sizes = [7, 7, 8], strides = [1, 1, 1]} : vector<8x8x8xf32> to vector<7x7x8xf32>
    %33 = arith.addf %31, %32 : vector<7x7x8xf32>
    %34 = vector.extract_strided_slice %2 {offsets = [1, 1, 0], sizes = [7, 7, 8], strides = [1, 1, 1]} : vector<8x8x8xf32> to vector<7x7x8xf32>
    %35 = arith.addf %33, %34 : vector<7x7x8xf32>
    %36 = vector.extract_strided_slice %14 {offsets = [0, 0, 0], sizes = [8, 8, 4], strides = [1, 1, 1]} : vector<8x8x8xf32> to vector<8x8x4xf32>
    %37 = vector.extract_strided_slice %21 {offsets = [0, 0, 0], sizes = [7, 8, 4], strides = [1, 1, 1]} : vector<7x8x8xf32> to vector<7x8x4xf32>
    %38 = vector.extract_strided_slice %28 {offsets = [0, 0, 0], sizes = [8, 7, 4], strides = [1, 1, 1]} : vector<8x7x8xf32> to vector<8x7x4xf32>
    %39 = vector.extract_strided_slice %35 {offsets = [0, 0, 0], sizes = [7, 7, 4], strides = [1, 1, 1]} : vector<7x7x8xf32> to vector<7x7x4xf32>
    %cst = arith.constant 0.000000e+00 : f32
    %40 = vector.broadcast %cst : f32 to vector<1x8x36xf32>
    %cst_16 = arith.constant 0.000000e+00 : f32
    %41 = vector.broadcast %cst_16 : f32 to vector<8x1x36xf32>
    %c0_17 = arith.constant 0 : index
    %c0_18 = arith.constant 0 : index
    %c0_19 = arith.constant 0 : index
    %42 = vector.load %arg7[%c0_17, %c0_18, %c0_19] : memref<8x8x36xf32, #tpu.memory_space<vmem>>, vector<1x8x36xf32>
    tpu.vector_store %arg7[%c0_17, %c0_18, %c0_19], %40 {strides = array<i32>} : memref<8x8x36xf32, #tpu.memory_space<vmem>>, vector<1x8x36xf32>,
    %c7 = arith.constant 7 : index
    %c0_20 = arith.constant 0 : index
    %c0_21 = arith.constant 0 : index
    %43 = vector.load %arg7[%c7, %c0_20, %c0_21] : memref<8x8x36xf32, #tpu.memory_space<vmem>>, vector<1x8x36xf32>
    tpu.vector_store %arg7[%c7, %c0_20, %c0_21], %40 {strides = array<i32>} : memref<8x8x36xf32, #tpu.memory_space<vmem>>, vector<1x8x36xf32>,
    %c0_22 = arith.constant 0 : index
    %c0_23 = arith.constant 0 : index
    %c0_24 = arith.constant 0 : index
    %44 = vector.load %arg7[%c0_22, %c0_23, %c0_24] : memref<8x8x36xf32, #tpu.memory_space<vmem>>, vector<8x1x36xf32>
    tpu.vector_store %arg7[%c0_22, %c0_23, %c0_24], %41 {strides = array<i32>} : memref<8x8x36xf32, #tpu.memory_space<vmem>>, vector<8x1x36xf32>,
    %c0_25 = arith.constant 0 : index
    %c7_26 = arith.constant 7 : index
    %c0_27 = arith.constant 0 : index
    %45 = vector.load %arg7[%c0_25, %c7_26, %c0_27] : memref<8x8x36xf32, #tpu.memory_space<vmem>>, vector<8x1x36xf32>
    tpu.vector_store %arg7[%c0_25, %c7_26, %c0_27], %41 {strides = array<i32>} : memref<8x8x36xf32, #tpu.memory_space<vmem>>, vector<8x1x36xf32>,
    %c1_28 = arith.constant 1 : index
    %c1_29 = arith.constant 1 : index
    %c0_30 = arith.constant 0 : index
    %46 = vector.load %arg7[%c1_28, %c1_29, %c0_30] : memref<8x8x36xf32, #tpu.memory_space<vmem>>, vector<7x7x4xf32>
    tpu.vector_store %arg7[%c1_28, %c1_29, %c0_30], %39 {strides = array<i32>} : memref<8x8x36xf32, #tpu.memory_space<vmem>>, vector<7x7x4xf32>,
    %c1_31 = arith.constant 1 : index
    %c0_32 = arith.constant 0 : index
    %c4 = arith.constant 4 : index
    %47 = vector.load %arg7[%c1_31, %c0_32, %c4] : memref<8x8x36xf32, #tpu.memory_space<vmem>>, vector<7x8x4xf32>
    tpu.vector_store %arg7[%c1_31, %c0_32, %c4], %37 {strides = array<i32>} : memref<8x8x36xf32, #tpu.memory_space<vmem>>, vector<7x8x4xf32>,
    %c1_33 = arith.constant 1 : index
    %c0_34 = arith.constant 0 : index
    %c8 = arith.constant 8 : index
    %48 = vector.load %arg7[%c1_33, %c0_34, %c8] : memref<8x8x36xf32, #tpu.memory_space<vmem>>, vector<7x7x4xf32>
    tpu.vector_store %arg7[%c1_33, %c0_34, %c8], %39 {strides = array<i32>} : memref<8x8x36xf32, #tpu.memory_space<vmem>>, vector<7x7x4xf32>,
    %c0_35 = arith.constant 0 : index
    %c1_36 = arith.constant 1 : index
    %c12 = arith.constant 12 : index
    %49 = vector.load %arg7[%c0_35, %c1_36, %c12] : memref<8x8x36xf32, #tpu.memory_space<vmem>>, vector<8x7x4xf32>
    tpu.vector_store %arg7[%c0_35, %c1_36, %c12], %38 {strides = array<i32>} : memref<8x8x36xf32, #tpu.memory_space<vmem>>, vector<8x7x4xf32>,
    %c0_37 = arith.constant 0 : index
    %c0_38 = arith.constant 0 : index
    %c16 = arith.constant 16 : index
    %50 = vector.load %arg7[%c0_37, %c0_38, %c16] : memref<8x8x36xf32, #tpu.memory_space<vmem>>, vector<8x8x4xf32>
    tpu.vector_store %arg7[%c0_37, %c0_38, %c16], %36 {strides = array<i32>} : memref<8x8x36xf32, #tpu.memory_space<vmem>>, vector<8x8x4xf32>,
    %c0_39 = arith.constant 0 : index
    %c0_40 = arith.constant 0 : index
    %c20 = arith.constant 20 : index
    %51 = vector.load %arg7[%c0_39, %c0_40, %c20] : memref<8x8x36xf32, #tpu.memory_space<vmem>>, vector<8x7x4xf32>
    tpu.vector_store %arg7[%c0_39, %c0_40, %c20], %38 {strides = array<i32>} : memref<8x8x36xf32, #tpu.memory_space<vmem>>, vector<8x7x4xf32>,
    %c0_41 = arith.constant 0 : index
    %c1_42 = arith.constant 1 : index
    %c24 = arith.constant 24 : index
    %52 = vector.load %arg7[%c0_41, %c1_42, %c24] : memref<8x8x36xf32, #tpu.memory_space<vmem>>, vector<7x7x4xf32>
    tpu.vector_store %arg7[%c0_41, %c1_42, %c24], %39 {strides = array<i32>} : memref<8x8x36xf32, #tpu.memory_space<vmem>>, vector<7x7x4xf32>,
    %c0_43 = arith.constant 0 : index
    %c0_44 = arith.constant 0 : index
    %c28 = arith.constant 28 : index
    %53 = vector.load %arg7[%c0_43, %c0_44, %c28] : memref<8x8x36xf32, #tpu.memory_space<vmem>>, vector<7x8x4xf32>
    tpu.vector_store %arg7[%c0_43, %c0_44, %c28], %37 {strides = array<i32>} : memref<8x8x36xf32, #tpu.memory_space<vmem>>, vector<7x8x4xf32>,
    %c0_45 = arith.constant 0 : index
    %c0_46 = arith.constant 0 : index
    %c32 = arith.constant 32 : index
    %54 = vector.load %arg7[%c0_45, %c0_46, %c32] : memref<8x8x36xf32, #tpu.memory_space<vmem>>, vector<7x7x4xf32>
    tpu.vector_store %arg7[%c0_45, %c0_46, %c32], %39 {strides = array<i32>} : memref<8x8x36xf32, #tpu.memory_space<vmem>>, vector<7x7x4xf32>,
    %c0_47 = arith.constant 0 : index
    %c0_48 = arith.constant 0 : index
    %c0_49 = arith.constant 0 : index
    %55 = vector.load %arg7[%c0_47, %c0_48, %c0_49] : memref<8x8x36xf32, #tpu.memory_space<vmem>>, vector<8x8x36xf32>
    %56 = vector.shape_cast %55 : vector<8x8x36xf32> to vector<64x36xf32>
    %57 = arith.truncf %56 : vector<64x36xf32> to vector<64x36xbf16>
    %c0_50 = arith.constant 0 : index
    %c0_51 = arith.constant 0 : index
    %58 = vector.load %arg2[%c0_50, %c0_51] : memref<8x36xbf16, #tpu.memory_space<vmem>>, vector<8x36xbf16>
    %cst_52 = arith.constant dense<0.000000e+00> : vector<8x64xf32>
    %59 = tpu.matmul %58, %57, %cst_52 {dimension_numbers = #tpu.dot_dimension_numbers<[1], [1], [0], [0], [0, 0, 1, 0], [], []>} : vector<8x36xbf16>, vector<64x36xbf16>, vector<8x64xf32> -> vector<8x64xf32>
    %c0_53 = arith.constant 0 : index
    %c0_54 = arith.constant 0 : index
    %60 = vector.load %arg3[%c0_53, %c0_54] : memref<8x1xf32, #tpu.memory_space<vmem>>, vector<8x1xf32>
    %61 = vector.broadcast %60 : vector<8x1xf32> to vector<8x64xf32>
    %62 = arith.addf %59, %61 : vector<8x64xf32>
    %cst_55 = arith.constant 0.000000e+00 : f32
    %63 = vector.broadcast %cst_55 : f32 to vector<8x64xf32>
    %64 = arith.subf %63, %62 : vector<8x64xf32>
    %65 = math.exp %64 : vector<8x64xf32>
    %cst_56 = arith.constant 1.000000e+00 : f32
    %66 = vector.broadcast %cst_56 : f32 to vector<8x64xf32>
    %67 = arith.addf %66, %65 : vector<8x64xf32>
    %68 = tpu.reciprocal %67 {approx = true} : vector<8x64xf32> -> vector<8x64xf32>
    %69 = arith.mulf %62, %68 : vector<8x64xf32>
    %c0_57 = arith.constant 0 : index
    %c0_58 = arith.constant 0 : index
    %c0_59 = arith.constant 0 : index
    %70 = vector.load %arg6[%c0_57, %c0_58, %c0_59] : memref<1x16x64xf32, #tpu.memory_space<vmem>>, vector<1x8x64xf32>
    %71 = vector.shape_cast %70 : vector<1x8x64xf32> to vector<8x64xf32>
    %72 = vector.shape_cast %69 : vector<8x64xf32> to vector<1x8x64xf32>
    tpu.vector_store %arg6[%c0_57, %c0_58, %c0_59], %72 {strides = array<i32>} : memref<1x16x64xf32, #tpu.memory_space<vmem>>, vector<1x8x64xf32>,
    %73 = vector.extract_strided_slice %14 {offsets = [0, 0, 4], sizes = [8, 8, 4], strides = [1, 1, 1]} : vector<8x8x8xf32> to vector<8x8x4xf32>
    %74 = vector.extract_strided_slice %28 {offsets = [0, 0, 4], sizes = [8, 7, 4], strides = [1, 1, 1]} : vector<8x7x8xf32> to vector<8x7x4xf32>
    %75 = vector.extract_strided_slice %21 {offsets = [0, 0, 4], sizes = [7, 8, 4], strides = [1, 1, 1]} : vector<7x8x8xf32> to vector<7x8x4xf32>
    %76 = vector.extract_strided_slice %35 {offsets = [0, 0, 4], sizes = [7, 7, 4], strides = [1, 1, 1]} : vector<7x7x8xf32> to vector<7x7x4xf32>
    %77 = vector.extract_strided_slice %73 {offsets = [0, 0, 0], sizes = [8, 1, 4], strides = [1, 1, 1]} : vector<8x8x4xf32> to vector<8x1x4xf32>
    %78 = vector.extract_strided_slice %74 {offsets = [0, 0, 0], sizes = [8, 1, 4], strides = [1, 1, 1]} : vector<8x7x4xf32> to vector<8x1x4xf32>
    %79 = arith.maximumf %77, %78 : vector<8x1x4xf32>
    %80 = vector.extract_strided_slice %75 {offsets = [0, 0, 0], sizes = [7, 1, 4], strides = [1, 1, 1]} : vector<7x8x4xf32> to vector<7x1x4xf32>
    %81 = vector.extract_strided_slice %76 {offsets = [0, 0, 0], sizes = [7, 1, 4], strides = [1, 1, 1]} : vector<7x7x4xf32> to vector<7x1x4xf32>
    %82 = arith.maximumf %80, %81 : vector<7x1x4xf32>
    %83 = vector.extract_strided_slice %79 {offsets = [0, 0, 0], sizes = [1, 1, 4], strides = [1, 1, 1]} : vector<8x1x4xf32> to vector<1x1x4xf32>
    %84 = vector.extract_strided_slice %82 {offsets = [0, 0, 0], sizes = [1, 1, 4], strides = [1, 1, 1]} : vector<7x1x4xf32> to vector<1x1x4xf32>
    %85 = arith.maximumf %83, %84 : vector<1x1x4xf32>
    %c0_60 = arith.constant 0 : index
    %c0_61 = arith.constant 0 : index
    %c0_62 = arith.constant 0 : index
    %86 = vector.load %arg8[%c0_60, %c0_61, %c0_62] : memref<8x8x4xf32, #tpu.memory_space<vmem>>, vector<1x1x4xf32>
    tpu.vector_store %arg8[%c0_60, %c0_61, %c0_62], %85 {strides = array<i32>} : memref<8x8x4xf32, #tpu.memory_space<vmem>>, vector<1x1x4xf32>,
    %87 = vector.extract_strided_slice %82 {offsets = [0, 0, 0], sizes = [6, 1, 4], strides = [1, 1, 1]} : vector<7x1x4xf32> to vector<6x1x4xf32>
    %88 = vector.extract_strided_slice %79 {offsets = [1, 0, 0], sizes = [6, 1, 4], strides = [1, 1, 1]} : vector<8x1x4xf32> to vector<6x1x4xf32>
    %89 = arith.maximumf %87, %88 : vector<6x1x4xf32>
    %90 = vector.extract_strided_slice %82 {offsets = [1, 0, 0], sizes = [6, 1, 4], strides = [1, 1, 1]} : vector<7x1x4xf32> to vector<6x1x4xf32>
    %91 = arith.maximumf %89, %90 : vector<6x1x4xf32>
    %c1_63 = arith.constant 1 : index
    %c0_64 = arith.constant 0 : index
    %c0_65 = arith.constant 0 : index
    %92 = vector.load %arg8[%c1_63, %c0_64, %c0_65] : memref<8x8x4xf32, #tpu.memory_space<vmem>>, vector<6x1x4xf32>
    tpu.vector_store %arg8[%c1_63, %c0_64, %c0_65], %91 {strides = array<i32>} : memref<8x8x4xf32, #tpu.memory_space<vmem>>, vector<6x1x4xf32>,
    %93 = vector.extract_strided_slice %82 {offsets = [6, 0, 0], sizes = [1, 1, 4], strides = [1, 1, 1]} : vector<7x1x4xf32> to vector<1x1x4xf32>
    %94 = vector.extract_strided_slice %79 {offsets = [7, 0, 0], sizes = [1, 1, 4], strides = [1, 1, 1]} : vector<8x1x4xf32> to vector<1x1x4xf32>
    %95 = arith.maximumf %93, %94 : vector<1x1x4xf32>
    %c7_66 = arith.constant 7 : index
    %c0_67 = arith.constant 0 : index
    %c0_68 = arith.constant 0 : index
    %96 = vector.load %arg8[%c7_66, %c0_67, %c0_68] : memref<8x8x4xf32, #tpu.memory_space<vmem>>, vector<1x1x4xf32>
    tpu.vector_store %arg8[%c7_66, %c0_67, %c0_68], %95 {strides = array<i32>} : memref<8x8x4xf32, #tpu.memory_space<vmem>>, vector<1x1x4xf32>,
    %97 = vector.extract_strided_slice %74 {offsets = [0, 0, 0], sizes = [8, 6, 4], strides = [1, 1, 1]} : vector<8x7x4xf32> to vector<8x6x4xf32>
    %98 = vector.extract_strided_slice %73 {offsets = [0, 1, 0], sizes = [8, 6, 4], strides = [1, 1, 1]} : vector<8x8x4xf32> to vector<8x6x4xf32>
    %99 = arith.maximumf %97, %98 : vector<8x6x4xf32>
    %100 = vector.extract_strided_slice %74 {offsets = [0, 1, 0], sizes = [8, 6, 4], strides = [1, 1, 1]} : vector<8x7x4xf32> to vector<8x6x4xf32>
    %101 = arith.maximumf %99, %100 : vector<8x6x4xf32>
    %102 = vector.extract_strided_slice %76 {offsets = [0, 0, 0], sizes = [7, 6, 4], strides = [1, 1, 1]} : vector<7x7x4xf32> to vector<7x6x4xf32>
    %103 = vector.extract_strided_slice %75 {offsets = [0, 1, 0], sizes = [7, 6, 4], strides = [1, 1, 1]} : vector<7x8x4xf32> to vector<7x6x4xf32>
    %104 = arith.maximumf %102, %103 : vector<7x6x4xf32>
    %105 = vector.extract_strided_slice %76 {offsets = [0, 1, 0], sizes = [7, 6, 4], strides = [1, 1, 1]} : vector<7x7x4xf32> to vector<7x6x4xf32>
    %106 = arith.maximumf %104, %105 : vector<7x6x4xf32>
    %107 = vector.extract_strided_slice %101 {offsets = [0, 0, 0], sizes = [1, 6, 4], strides = [1, 1, 1]} : vector<8x6x4xf32> to vector<1x6x4xf32>
    %108 = vector.extract_strided_slice %106 {offsets = [0, 0, 0], sizes = [1, 6, 4], strides = [1, 1, 1]} : vector<7x6x4xf32> to vector<1x6x4xf32>
    %109 = arith.maximumf %107, %108 : vector<1x6x4xf32>
    %c0_69 = arith.constant 0 : index
    %c1_70 = arith.constant 1 : index
    %c0_71 = arith.constant 0 : index
    %110 = vector.load %arg8[%c0_69, %c1_70, %c0_71] : memref<8x8x4xf32, #tpu.memory_space<vmem>>, vector<1x6x4xf32>
    tpu.vector_store %arg8[%c0_69, %c1_70, %c0_71], %109 {strides = array<i32>} : memref<8x8x4xf32, #tpu.memory_space<vmem>>, vector<1x6x4xf32>,
    %111 = vector.extract_strided_slice %106 {offsets = [0, 0, 0], sizes = [6, 6, 4], strides = [1, 1, 1]} : vector<7x6x4xf32> to vector<6x6x4xf32>
    %112 = vector.extract_strided_slice %101 {offsets = [1, 0, 0], sizes = [6, 6, 4], strides = [1, 1, 1]} : vector<8x6x4xf32> to vector<6x6x4xf32>
    %113 = arith.maximumf %111, %112 : vector<6x6x4xf32>
    %114 = vector.extract_strided_slice %106 {offsets = [1, 0, 0], sizes = [6, 6, 4], strides = [1, 1, 1]} : vector<7x6x4xf32> to vector<6x6x4xf32>
    %115 = arith.maximumf %113, %114 : vector<6x6x4xf32>
    %c1_72 = arith.constant 1 : index
    %c1_73 = arith.constant 1 : index
    %c0_74 = arith.constant 0 : index
    %116 = vector.load %arg8[%c1_72, %c1_73, %c0_74] : memref<8x8x4xf32, #tpu.memory_space<vmem>>, vector<6x6x4xf32>
    tpu.vector_store %arg8[%c1_72, %c1_73, %c0_74], %115 {strides = array<i32>} : memref<8x8x4xf32, #tpu.memory_space<vmem>>, vector<6x6x4xf32>,
    %117 = vector.extract_strided_slice %106 {offsets = [6, 0, 0], sizes = [1, 6, 4], strides = [1, 1, 1]} : vector<7x6x4xf32> to vector<1x6x4xf32>
    %118 = vector.extract_strided_slice %101 {offsets = [7, 0, 0], sizes = [1, 6, 4], strides = [1, 1, 1]} : vector<8x6x4xf32> to vector<1x6x4xf32>
    %119 = arith.maximumf %117, %118 : vector<1x6x4xf32>
    %c7_75 = arith.constant 7 : index
    %c1_76 = arith.constant 1 : index
    %c0_77 = arith.constant 0 : index
    %120 = vector.load %arg8[%c7_75, %c1_76, %c0_77] : memref<8x8x4xf32, #tpu.memory_space<vmem>>, vector<1x6x4xf32>
    tpu.vector_store %arg8[%c7_75, %c1_76, %c0_77], %119 {strides = array<i32>} : memref<8x8x4xf32, #tpu.memory_space<vmem>>, vector<1x6x4xf32>,
    %121 = vector.extract_strided_slice %74 {offsets = [0, 6, 0], sizes = [8, 1, 4], strides = [1, 1, 1]} : vector<8x7x4xf32> to vector<8x1x4xf32>
    %122 = vector.extract_strided_slice %73 {offsets = [0, 7, 0], sizes = [8, 1, 4], strides = [1, 1, 1]} : vector<8x8x4xf32> to vector<8x1x4xf32>
    %123 = arith.maximumf %121, %122 : vector<8x1x4xf32>
    %124 = vector.extract_strided_slice %76 {offsets = [0, 6, 0], sizes = [7, 1, 4], strides = [1, 1, 1]} : vector<7x7x4xf32> to vector<7x1x4xf32>
    %125 = vector.extract_strided_slice %75 {offsets = [0, 7, 0], sizes = [7, 1, 4], strides = [1, 1, 1]} : vector<7x8x4xf32> to vector<7x1x4xf32>
    %126 = arith.maximumf %124, %125 : vector<7x1x4xf32>
    %127 = vector.extract_strided_slice %123 {offsets = [0, 0, 0], sizes = [1, 1, 4], strides = [1, 1, 1]} : vector<8x1x4xf32> to vector<1x1x4xf32>
    %128 = vector.extract_strided_slice %126 {offsets = [0, 0, 0], sizes = [1, 1, 4], strides = [1, 1, 1]} : vector<7x1x4xf32> to vector<1x1x4xf32>
    %129 = arith.maximumf %127, %128 : vector<1x1x4xf32>
    %c0_78 = arith.constant 0 : index
    %c7_79 = arith.constant 7 : index
    %c0_80 = arith.constant 0 : index
    %130 = vector.load %arg8[%c0_78, %c7_79, %c0_80] : memref<8x8x4xf32, #tpu.memory_space<vmem>>, vector<1x1x4xf32>
    tpu.vector_store %arg8[%c0_78, %c7_79, %c0_80], %129 {strides = array<i32>} : memref<8x8x4xf32, #tpu.memory_space<vmem>>, vector<1x1x4xf32>,
    %131 = vector.extract_strided_slice %126 {offsets = [0, 0, 0], sizes = [6, 1, 4], strides = [1, 1, 1]} : vector<7x1x4xf32> to vector<6x1x4xf32>
    %132 = vector.extract_strided_slice %123 {offsets = [1, 0, 0], sizes = [6, 1, 4], strides = [1, 1, 1]} : vector<8x1x4xf32> to vector<6x1x4xf32>
    %133 = arith.maximumf %131, %132 : vector<6x1x4xf32>
    %134 = vector.extract_strided_slice %126 {offsets = [1, 0, 0], sizes = [6, 1, 4], strides = [1, 1, 1]} : vector<7x1x4xf32> to vector<6x1x4xf32>
    %135 = arith.maximumf %133, %134 : vector<6x1x4xf32>
    %c1_81 = arith.constant 1 : index
    %c7_82 = arith.constant 7 : index
    %c0_83 = arith.constant 0 : index
    %136 = vector.load %arg8[%c1_81, %c7_82, %c0_83] : memref<8x8x4xf32, #tpu.memory_space<vmem>>, vector<6x1x4xf32>
    tpu.vector_store %arg8[%c1_81, %c7_82, %c0_83], %135 {strides = array<i32>} : memref<8x8x4xf32, #tpu.memory_space<vmem>>, vector<6x1x4xf32>,
    %137 = vector.extract_strided_slice %126 {offsets = [6, 0, 0], sizes = [1, 1, 4], strides = [1, 1, 1]} : vector<7x1x4xf32> to vector<1x1x4xf32>
    %138 = vector.extract_strided_slice %123 {offsets = [7, 0, 0], sizes = [1, 1, 4], strides = [1, 1, 1]} : vector<8x1x4xf32> to vector<1x1x4xf32>
    %139 = arith.maximumf %137, %138 : vector<1x1x4xf32>
    %c7_84 = arith.constant 7 : index
    %c7_85 = arith.constant 7 : index
    %c0_86 = arith.constant 0 : index
    %140 = vector.load %arg8[%c7_84, %c7_85, %c0_86] : memref<8x8x4xf32, #tpu.memory_space<vmem>>, vector<1x1x4xf32>
    tpu.vector_store %arg8[%c7_84, %c7_85, %c0_86], %139 {strides = array<i32>} : memref<8x8x4xf32, #tpu.memory_space<vmem>>, vector<1x1x4xf32>,
    %c0_87 = arith.constant 0 : index
    %c0_88 = arith.constant 0 : index
    %c0_89 = arith.constant 0 : index
    %141 = vector.load %arg8[%c0_87, %c0_88, %c0_89] : memref<8x8x4xf32, #tpu.memory_space<vmem>>, vector<8x8x4xf32>
    %142 = vector.shape_cast %141 : vector<8x8x4xf32> to vector<64x4xf32>
    %143 = arith.truncf %142 : vector<64x4xf32> to vector<64x4xbf16>
    %c0_90 = arith.constant 0 : index
    %c0_91 = arith.constant 0 : index
    %144 = vector.load %arg4[%c0_90, %c0_91] : memref<8x4xbf16, #tpu.memory_space<vmem>>, vector<8x4xbf16>
    %cst_92 = arith.constant dense<0.000000e+00> : vector<8x64xf32>
    %145 = tpu.matmul %144, %143, %cst_92 {dimension_numbers = #tpu.dot_dimension_numbers<[1], [1], [0], [0], [0, 0, 1, 0], [], []>} : vector<8x4xbf16>, vector<64x4xbf16>, vector<8x64xf32> -> vector<8x64xf32>
    %c0_93 = arith.constant 0 : index
    %c0_94 = arith.constant 0 : index
    %146 = vector.load %arg5[%c0_93, %c0_94] : memref<8x1xf32, #tpu.memory_space<vmem>>, vector<8x1xf32>
    %147 = vector.broadcast %146 : vector<8x1xf32> to vector<8x64xf32>
    %148 = arith.addf %145, %147 : vector<8x64xf32>
    %cst_95 = arith.constant 0.000000e+00 : f32
    %149 = vector.broadcast %cst_95 : f32 to vector<8x64xf32>
    %150 = arith.subf %149, %148 : vector<8x64xf32>
    %151 = math.exp %150 : vector<8x64xf32>
    %cst_96 = arith.constant 1.000000e+00 : f32
    %152 = vector.broadcast %cst_96 : f32 to vector<8x64xf32>
    %153 = arith.addf %152, %151 : vector<8x64xf32>
    %154 = tpu.reciprocal %153 {approx = true} : vector<8x64xf32> -> vector<8x64xf32>
    %155 = arith.mulf %148, %154 : vector<8x64xf32>
    %c0_97 = arith.constant 0 : index
    %c8_98 = arith.constant 8 : index
    %c0_99 = arith.constant 0 : index
    %156 = vector.load %arg6[%c0_97, %c8_98, %c0_99] : memref<1x16x64xf32, #tpu.memory_space<vmem>>, vector<1x8x64xf32>
    %157 = vector.shape_cast %156 : vector<1x8x64xf32> to vector<8x64xf32>
    %158 = vector.shape_cast %155 : vector<8x64xf32> to vector<1x8x64xf32>
    tpu.vector_store %arg6[%c0_97, %c8_98, %c0_99], %158 {strides = array<i32>} : memref<1x16x64xf32, #tpu.memory_space<vmem>>, vector<1x8x64xf32>,
    return
  }
  func.func @transform_0(%arg0: i32) -> (i32, i32, i32, i32, i32) {
    %c0_i32 = arith.constant 0 : i32
    %c0_i32_0 = arith.constant 0 : i32
    %c0_i32_1 = arith.constant 0 : i32
    %c0_i32_2 = arith.constant 0 : i32
    %c0_i32_3 = arith.constant 0 : i32
    return %arg0, %c0_i32, %c0_i32_0, %c0_i32_1, %c0_i32_2 : i32, i32, i32, i32, i32
  }
  func.func @transform_1(%arg0: i32) -> (i32, i32) {
    %c0_i32 = arith.constant 0 : i32
    %c0_i32_0 = arith.constant 0 : i32
    %c0_i32_1 = arith.constant 0 : i32
    return %c0_i32, %c0_i32_0 : i32, i32
  }
  func.func @transform_2(%arg0: i32) -> (i32, i32) {
    %c0_i32 = arith.constant 0 : i32
    %c0_i32_0 = arith.constant 0 : i32
    %c0_i32_1 = arith.constant 0 : i32
    return %c0_i32, %c0_i32_0 : i32, i32
  }
  func.func @transform_3(%arg0: i32) -> (i32, i32) {
    %c0_i32 = arith.constant 0 : i32
    %c0_i32_0 = arith.constant 0 : i32
    %c0_i32_1 = arith.constant 0 : i32
    return %c0_i32, %c0_i32_0 : i32, i32
  }
  func.func @transform_4(%arg0: i32) -> (i32, i32) {
    %c0_i32 = arith.constant 0 : i32
    %c0_i32_0 = arith.constant 0 : i32
    %c0_i32_1 = arith.constant 0 : i32
    return %c0_i32, %c0_i32_0 : i32, i32
  }
  func.func @transform_5(%arg0: i32) -> (i32, i32, i32) {
    %c0_i32 = arith.constant 0 : i32
    %c0_i32_0 = arith.constant 0 : i32
    %c0_i32_1 = arith.constant 0 : i32
    return %arg0, %c0_i32, %c0_i32_0 : i32, i32, i32
  }
}

</mosaic_0001>

<bundles_post_ra>
// kernel: adown_forward.1
= control target key start
LH: loop header
LB: loop body
LE: loop exit
PB: predicated region body
PF: predicated region fallthrough
CT: control target
= control target key end

     0   :  { %s1458_s18 = smov 0   ;;  %s2154_s0 = inlined_call_operand.vmem [shape: bf16[2,4,8,8,8], index: 0, kind: input, shape index: {}]   ;;  %s2155_s1 = inlined_call_operand.vmem [shape: bf16[8,36], index: 1, kind: input, shape index: {}]   ;;  %s2156_s2 = inlined_call_operand.vmem [shape: f32[8,1], index: 2, kind: input, shape index: {}]   ;;  %s2157_s3 = inlined_call_operand.vmem [shape: bf16[8,4], index: 3, kind: input, shape index: {}]   ;;  %s2158_s4 = inlined_call_operand.vmem [shape: f32[8,1], index: 4, kind: input, shape index: {}]   ;;  %s2159_s5 = inlined_call_operand.vmem [shape: f32[2,16,64], index: 5, kind: output, shape index: {}]  }
   0x1 LB: > { %s1226_s19 = sadd.s32 4294967295, %s1414_s18   ;;  %p1230_p0 = scmp.ge.s32.totalorder %s1414_s18, 1  ;;  %s1414_s18 = sphi %s1458_s18, %s15_s18  }
   0x2   : > { %p187_p1 = scmp.lt.s32.totalorder %s1414_s18, 3 }
   0x4   : > { %p188_p2 = pnand %p1230_p0, %p187_p1 }
   0x5   : > { %p1466_p3 = scmp.lt.s32.totalorder (!%p188_p2), %s1226_s19, 1  ;;  %vm435_vm0 = vcmask (!%p188_p2), 286720   ;;  %v1416_v0 = vmov (!%p188_p2), 0.0   ;;  %vm431_vm1 = vcmask (!%p188_p2), 293888   ;;  %vm453_vm2 = vcmask (!%p188_p2), 30720   ;;  %s1417_s25 = smov (!%p188_p2), 4  }
   0x6   : > { %191 = sbr.rel (%p188_p2) target bundleno = 570 (0x23a), region = 40  ;;  %437 = vst.msk [vmem:[#allocation2 + $0x8] sm:$0x1] (!%p188_p2), %vm435_vm0, %v1416_v0  ;;  %445 = vst.msk [vmem:[#allocation2 + $0xf] sm:$0x1] (!%p188_p2), %vm435_vm0, %v1416_v0  ;;  %1354 = vmatprep.subr.bf16.mxu0 (!%p188_p2), %v1416_v0  ;;  %1366 = vmatprep.subr.bf16.mxu1 (!%p188_p2), %v1416_v0  ;;  %s1418_s26 = smov (!%p188_p2), 12  }
   0x7   : > { %438 = vst.msk [vmem:[#allocation2 + $0x10] sm:$0x1] (!%p188_p2), %vm435_vm0, %v1416_v0  ;;  %439 = vst.msk [vmem:[#allocation2 + $0x18] sm:$0x1] (!%p188_p2), %vm435_vm0, %v1416_v0  ;;  %s1419_s27 = smov (!%p188_p2), 8   ;;  %s1420_s28 = smov (!%p188_p2), 16  }
   0x8   : > { %440 = vst.msk [vmem:[#allocation2 + $0x20] sm:$0x1] (!%p188_p2), %vm435_vm0, %v1416_v0  ;;  %441 = vst.msk [vmem:[#allocation2 + $0x28] sm:$0x1] (!%p188_p2), %vm435_vm0, %v1416_v0  ;;  %s1421_s29 = smov (!%p188_p2), 20   ;;  %s1422_s30 = smov (!%p188_p2), 24  }
   0x9   : > { %442 = vst.msk [vmem:[#allocation2 + $0x30] sm:$0x1] (!%p188_p2), %vm435_vm0, %v1416_v0  ;;  %446 = vst.msk [vmem:[#allocation2 + $0x17] sm:$0x1] (!%p188_p2), %vm435_vm0, %v1416_v0  ;;  %s1423_s6 = smov (!%p188_p2), 28   ;;  %s1424_s7 = smov (!%p188_p2), 32  }
   0xa   : > { %447 = vst.msk [vmem:[#allocation2 + $0x1f] sm:$0x1] (!%p188_p2), %vm435_vm0, %v1416_v0  ;;  %448 = vst.msk [vmem:[#allocation2 + $0x27] sm:$0x1] (!%p188_p2), %vm435_vm0, %v1416_v0  ;;  %s1425_s8 = smov (!%p188_p2), 124   ;;  %vm489_vm3 = vcmask (!%p188_p2), 64544  }
   0xb   : > { %449 = vst.msk [vmem:[#allocation2 + $0x2f] sm:$0x1] (!%p188_p2), %vm435_vm0, %v1416_v0  ;;  %450 = vst.msk [vmem:[#allocation2 + $0x37] sm:$0x1] (!%p188_p2), %vm435_vm0, %v1416_v0  ;;  %vm565_vm4 = vcmask (!%p188_p2), 129120   ;;  %vm525_vm5 = vcmask (!%p188_p2), 96320  }
   0xc   : > { %432 = vst.msk [vmem:[#allocation2] sm:$0xff] (!%p188_p2), %vm431_vm1, %v1416_v0  ;;  %434 = vst.msk [vmem:[#allocation2 + $0x38] sm:$0xff] (!%p188_p2), %vm431_vm1, %v1416_v0  ;;  %vm606_vm6 = vcmask (!%p188_p2), 162944   ;;  %vm639_vm7 = vcmask (!%p188_p2), 194720   ;;  %vm669_vm8 = vcmask (!%p188_p2), 227520   ;;  %vm698_vm9 = vcmask (!%p188_p2), 261344  }
   0xd   : > { %s2164_s19 = smov (!%p1466_p3, %s1226_s19), 1  ;;  %444 = vst.msk [vmem:[#allocation2 + $0x7] sm:$0x1] %vm435_vm0, %v1416_v0  ;;  %436 = vst.msk [vmem:[#allocation2] sm:$0x1] %vm435_vm0, %v1416_v0  ;;  %vm727_vm10 = vcmask 293120  }
   0xe   : > { %s1263_s21 = sshll.u32 %s2164_s19, 7  ;;  %443 = vst.msk [vmem:[#allocation2 + $0x38] sm:$0x1] %vm435_vm0, %v1416_v0  ;;  %451 = vst.msk [vmem:[#allocation2 + $0x3f] sm:$0x1] %vm435_vm0, %v1416_v0  ;;  %vm837_vm11 = vcmask 24576  }
   0xf   : > { %s1508_s24 = scalar_lea.vmem %s2154_s0, %s1263_s21  ;;  %vm984_vm12 = vcmask 29696   ;;  %vm1039_vm13 = vcmask 30726   ;;  %vm1426_vm14 = vmmov 0   ;;  %vm1108_vm15 = vcmask 31744   ;;  %s1264_s17 = sshll.u32 %s2164_s19, 4 }
  0x10   : > { %v1266_v1 = vld [vmem:[%s1508_s24] sm:$0xff]   ;;  %v1329_v9 = vld [vmem:[%s1508_s24 + $0x8] sm:$0xff]   ;;  %v1561_v47 = vld [vmem:[%s1508_s24 + $0x10] sm:$0xff]   ;;  %1362 = vmatprep.mubr.msk.bf16.mxu0 %vm1426_vm14, %v1416_v0  ;;  %1374 = vmatprep.mubr.msk.bf16.mxu1 %vm1426_vm14, %v1416_v0  ;;  %s224_s22 = scalar_lea.vmem %s2159_s5, %s1264_s17  ;;  %vm815_vm0 = vcmask 523264  }
  0x11   : > { %v1332_v2 = vld [vmem:[%s1508_s24 + $0x20] sm:$0xff]   ;;  %v1268_v4 = vunpack.c.h.bf16 %v1266_v1  ;;  %v1333_v10 = vld [vmem:[%s1508_s24 + $0x28] sm:$0xff]   ;;  %v1267_v14 = vunpack.c.l.bf16 %v1266_v1  ;;  %v1524_v17 = vunpack.c.l.bf16 %v1329_v9  ;;  %v1334_v50 = vld [vmem:[%s1508_s24 + $0x30] sm:$0xff]   ;;  %v1570_v51 = vunpack.c.h.bf16 %v1329_v9 }
  0x12   : > { %v1336_v3 = vld [vmem:[%s1508_s24 + $0x40] sm:$0xff]   ;;  %v1283_v5 = vunpack.c.l.bf16 %v1332_v2  ;;  %v1284_v6 = vunpack.c.h.bf16 %v1332_v2  ;;  %v1526_v18 = vunpack.c.l.bf16 %v1333_v10  ;;  %v1337_v44 = vld [vmem:[%s1508_s24 + $0x48] sm:$0xff]   ;;  %v1558_v46 = vunpack.c.h.bf16 %v1333_v10 }
  0x13   : > { %v1299_v7 = vunpack.c.l.bf16 %v1336_v3  ;;  %v1340_v8 = vld [vmem:[%s1508_s24 + $0x60] sm:$0xff]   ;;  %v1300_v11 = vunpack.c.h.bf16 %v1336_v3  ;;  %v355_v15 = vrot.slane %v1268_v4, 1  ;;  %v354_v21 = vrot.slane %v1267_v14, 1  ;;  %v1341_v45 = vld [vmem:[%s1508_s24 + $0x68] sm:$0xff]  }
  0x14   : > { %v1315_v12 = vunpack.c.l.bf16 %v1340_v8  ;;  %v1316_v13 = vunpack.c.h.bf16 %v1340_v8  ;;  %v356_v24 = vrot.slane %v1524_v17, 1  ;;  %v294_v30 = vadd.f32 %v1284_v6, %v1268_v4 }
  0x15   : > { %v386_v16 = vrot.slane %v1299_v7, 1  ;;  %v387_v25 = vrot.slane %v1300_v11, 1  ;;  %v293_v33 = vadd.f32 %v1283_v5, %v1267_v14  ;;  %v1564_v49 = vunpack.c.l.bf16 %v1337_v44 }
  0x16   : > { %v317_v19 = vadd.f32 %v1315_v12, %v1299_v7  ;;  %v338_v20 = vadd.f32 %v1315_v12, %v1283_v5  ;;  %v410_v22 = vadd.f32 %v1315_v12, %v1284_v6  ;;  %v339_v23 = vadd.f32 %v1316_v13, %v1284_v6 }
  0x17   : > { %v411_v26 = vadd.f32 %v1316_v13, %v1526_v18  ;;  %v302_v39 = vadd.f32 %v1300_v11, %v294_v30  ;;  %v301_v40 = vadd.f32 %v1299_v7, %v293_v33  ;;  %v318_v41 = vadd.f32 %v1316_v13, %v1300_v11 }
  0x18   : > { %v324_v27 = vadd.f32 %v1268_v4, %v317_v19  ;;  %v370_v28 = vadd.f32 %v354_v21, %v338_v20  ;;  %v417_v29 = vadd.f32 %v410_v22, %v386_v16  ;;  %v371_v31 = vadd.f32 %v355_v15, %v339_v23 }
  0x19   : > { %v418_v32 = vadd.f32 %v411_v26, %v387_v25  ;;  %v310_v42 = vadd.f32 %v1316_v13, %v302_v39  ;;  %v1554_v43 = vadd.f32 %v1315_v12, %v301_v40  ;;  %v325_v48 = vadd.f32 %v1524_v17, %v318_v41  ;;  %v1338_v26 = vld [vmem:[%s1508_s24 + $0x50] sm:$0xff]  }
  0x1a   : > { %v1530_v34 = vadd.f32 %v1284_v6, %v324_v27  ;;  %v1532_v35 = vadd.f32 %v386_v16, %v370_v28  ;;  %v1534_v36 = vadd.f32 %v417_v29, %v355_v15  ;;  %v1544_v38 = vadd.f32 %v387_v25, %v371_v31  ;;  %v1342_v27 = vld [vmem:[%s1508_s24 + $0x70] sm:$0xff]  }
  0x1b   : > { %v1538_v37 = vadd.f32 %v418_v32, %v356_v24  ;;  %v1572_v52 = vunpack.c.h.bf16 %v1337_v44  ;;  %v1574_v53 = vunpack.c.l.bf16 %v1341_v45  ;;  %v890_v54 = vrot.slane %v310_v42, 1 }
  0x1c   : > { %468 = vrot.lane.b32.xlu0 %v1530_v34, %s1417_s25  ;;  %541 = vrot.lane.b32.xlu1 %v1532_v35, %s1418_s26  ;;  %454 = vst.msk [vmem:[#allocation2 + $0x9] sm:$0x7f] %vm453_vm2, %v1534_v36  ;;  %v937_v55 = vrot.slane %v1530_v34, 1  ;;  %v388_v56 = vrot.slane %v1564_v49, 1  ;;  %v1579_v57 = vunpack.c.l.bf16 %v1561_v47  ;;  %v1581_v58 = vunpack.c.h.bf16 %v1341_v45 }
  0x1d   : > { %455 = vst.msk [vmem:[#allocation2 + $0x11] sm:$0x7f] %vm453_vm2, %v1538_v37  ;;  %v357_v59 = vrot.slane %v1570_v51, 1  ;;  %v412_v60 = vadd.f32 %v1574_v53, %v1558_v46  ;;  %v1586_v61 = vunpack.c.l.bf16 %v1334_v50  ;;  %v1589_v62 = vadd.f32 %v1526_v18, %v325_v48  ;;  %v1671_v48 = vld [vmem:[%s1508_s24 + $0x18] sm:$0xff]  }
  0x1e   : > { %v914_v63 = vrot.slane %v1544_v38, 1  ;;  %v958_v1 = vrot.slane %v1534_v36, 1  ;;  %v358_v3 = vrot.slane %v1579_v57, 1  ;;  %v389_v4 = vrot.slane %v1572_v52, 1 }
  0x1f   : > { %v419_v2 = vadd.f32 %v412_v60, %v388_v56  ;;  %v413_v5 = vadd.f32 %v1581_v58, %v1586_v61  ;;  %v889_v6 = vrot.slane %v1554_v43, 1  ;;  %v906_v7 = vmax.f32 %v1544_v38, %v890_v54  ;;  %v1677_v60 = vld [vmem:[%s1508_s24 + $0x38] sm:$0xff]  }
  0x20   : > { %504 = vrot.lane.b32.xlu0 %v1534_v36, %s1419_s27  ;;  %543 = vrot.lane.b32.xlu1 %v1544_v38, %s1418_s26  ;;  %v938_v8 = vrot.slane %v1589_v62, 1  ;;  %v1607_v9 = vmax.f32 %v1534_v36, %v937_v55  ;;  %v825_v12 = vmax.f32 %v1530_v34, %v1534_v36  ;;  %v818_v13 = vmax.f32 %v310_v42, %v1544_v38 }
  0x21   : > { %v1611_v10 = vadd.f32 %v419_v2, %v357_v59  ;;  %v420_v11 = vadd.f32 %v413_v5, %v389_v4  ;;  %v959_v14 = vrot.slane %v1538_v37, 1  ;;  %v913_v15 = vrot.slane %v1532_v35, 1 }
  0x22   : > { %v930_v19 = vmax.f32 %v906_v7, %v914_v63  ;;  %v1631_v20 = vmax.f32 %v1538_v37, %v938_v8  ;;  %v1634_v21 = vmax.f32 %v1607_v9, %v958_v1  ;;  %v1637_v22 = vmax.f32 %v1532_v35, %v889_v6 }
  0x23   : > { %v1626_v16 = vadd.f32 %v420_v11, %v358_v3  ;;  %456 = vst.msk [vmem:[#allocation2 + $0x19] sm:$0x7f] %vm453_vm2, %v1611_v10  ;;  %v817_v23 = vmax.f32 %v1554_v43, %v1532_v35  ;;  %v319_v25 = vadd.f32 %v1574_v53, %v1564_v49  ;;  %v1653_v28 = vmax.f32 %v1589_v62, %v1538_v37 }
  0x24   : > { %584 = vrot.lane.b32.xlu1 %v310_v42, %s1420_s28  ;;  %582 = vrot.lane.b32.xlu0 %v1554_v43, %s1420_s28  ;;  %v839_v29 = vmax.f32 %v825_v12, %v818_v13  ;;  %v1656_v30 = vmax.f32 %v1631_v20, %v959_v14  ;;  %v986_v31 = vmax.f32 %v1634_v21, %v930_v19  ;;  %v1323_v39 = vunpack.c.l.bf16 %v1342_v27 }
  0x25   : > { %457 = vst.msk [vmem:[#allocation2 + $0x21] sm:$0x7f] %vm453_vm2, %v1626_v16  ;;  %v929_v32 = vmax.f32 %v1637_v22, %v913_v15  ;;  %v1041_v33 = vmax.f32 %v1607_v9, %v906_v7  ;;  %v326_v40 = vadd.f32 %v1570_v51, %v319_v25  ;;  %v1276_v41 = vunpack.c.h.bf16 %v1561_v47 }
  0x26   : > { %v845_v42 = vmax.f32 %v839_v29, %v1653_v28  ;;  %v1034_v43 = vmax.f32 %v1637_v22, %v1607_v9  ;;  %v1308_v44 = vunpack.c.h.bf16 %v1338_v26  ;;  %v1324_v45 = vunpack.c.h.bf16 %v1342_v27 }
  0x27   : > { %v979_v47 = vmax.f32 %v929_v32, %v1634_v21  ;;  %v1047_v54 = vmax.f32 %v1041_v33, %v1631_v20  ;;  %v359_v63 = vrot.slane %v1276_v41, 1  ;;  %v1682_v5 = vadd.f32 %v1558_v46, %v326_v40 }
  0x28   : > { %617 = vrot.lane.b32.xlu1 %v1544_v38, %s1421_s29  ;;  %615 = vrot.lane.b32.xlu0 %v1532_v35, %s1421_s29  ;;  %v1292_v35 = vunpack.c.h.bf16 %v1334_v50  ;;  %v1307_v38 = vunpack.c.l.bf16 %v1338_v26  ;;  %v992_v50 = vmax.f32 %v986_v31, %v1656_v30  ;;  %v1686_v6 = vadd.f32 %v1574_v53, %v1526_v18 }
  0x29   : > { %v1689_v8 = vunpack.c.l.bf16 %v1671_v48  ;;  %v1694_v11 = vunpack.c.l.bf16 %v1677_v60  ;;  %v391_v13 = vrot.slane %v1308_v44, 1  ;;  %v342_v19 = vadd.f32 %v1323_v39, %v1586_v61 }
  0x2a   : > { %v321_v55 = vadd.f32 %v1323_v39, %v1307_v38  ;;  %v390_v1 = vrot.slane %v1307_v38, 1  ;;  %v414_v2 = vadd.f32 %v1323_v39, %v1292_v35  ;;  %v298_v21 = vadd.f32 %v1292_v35, %v1276_v41 }
  0x2b   : > { %v360_v15 = vrot.slane %v1689_v8, 1  ;;  %v415_v25 = vadd.f32 %v1324_v45, %v1694_v11  ;;  %v297_v26 = vadd.f32 %v1586_v61, %v1579_v57  ;;  %v374_v27 = vadd.f32 %v358_v3, %v342_v19 }
  0x2c   : > { %650 = vrot.lane.b32.xlu1 %v1538_v37, %s1422_s30  ;;  %648 = vrot.lane.b32.xlu0 %v1534_v36, %s1422_s30  ;;  %v328_v7 = vadd.f32 %v1276_v41, %v321_v55  ;;  %v421_v9 = vadd.f32 %v414_v2, %v390_v1  ;;  %v306_v29 = vadd.f32 %v1308_v44, %v298_v21 }
  0x2d   : > { %v322_v31 = vadd.f32 %v1324_v45, %v1308_v44  ;;  %v1715_v41 = vadd.f32 %v390_v1, %v374_v27 }
  0x2e   : > { %v1696_v14 = vadd.f32 %v1292_v35, %v328_v7  ;;  %v1700_v22 = vadd.f32 %v421_v9, %v359_v63  ;;  %v1717_v3 = vadd.f32 %v1324_v45, %v306_v29 }
  0x2f   : > { %v917_v2 = vrot.slane %v1715_v41, 1 }
  0x30   : > { %679 = vrot.lane.b32.xlu1 %v1589_v62, %s1423_s6  ;;  %677 = vrot.lane.b32.xlu0 %v1530_v34, %s1423_s6  ;;  %v832_v34 = vmax.f32 %v817_v23, %v825_v12  ;;  %v343_v12 = vadd.f32 %v1324_v45, %v1292_v35  ;;  %v941_v32 = vrot.slane %v1696_v14, 1  ;;  %v422_v35 = vadd.f32 %v415_v25, %v391_v13 }
  0x31   : > { %458 = vst.msk [vmem:[#allocation2 + $0x29] sm:$0x7f] %vm453_vm2, %v1700_v22  ;;  %v962_v40 = vrot.slane %v1700_v22, 1  ;;  %v1722_v44 = vmax.f32 %v1696_v14, %v1700_v22  ;;  %v894_v45 = vrot.slane %v1717_v3, 1  ;;  %v295_v25 = vadd.f32 %v1526_v18, %v1524_v17 }
  0x32   : > { %v375_v23 = vadd.f32 %v359_v63, %v343_v12  ;;  %v1732_v55 = vmax.f32 %v1700_v22, %v941_v32  ;;  %v372_v18 = vadd.f32 %v356_v24, %v1686_v6 }
  0x33   : > { %v303_v6 = vadd.f32 %v1564_v49, %v295_v25 }
  0x34   : > { %708 = vrot.lane.b32.xlu1 %v1538_v37, %s1424_s7  ;;  %706 = vrot.lane.b32.xlu0 %v1534_v36, %s1424_s7  ;;  %v341_v36 = vadd.f32 %v1581_v58, %v1558_v46  ;;  %v1710_v33 = vadd.f32 %v391_v13, %v375_v23  ;;  %v1750_v12 = vmax.f32 %v1732_v55, %v962_v40 }
  0x35   : > { %v296_v23 = vadd.f32 %v1558_v46, %v1570_v51  ;;  %v1343_v51 = vld [vmem:[%s1508_s24 + $0x78] sm:$0xff]   ;;  %v1821_v49 = vadd.f32 %v1574_v53, %v303_v6  ;;  %v320_v53 = vadd.f32 %v1581_v58, %v1572_v52 }
  0x36   : > { %v822_v1 = vmax.f32 %v1717_v3, %v1710_v33  ;;  %v373_v21 = vadd.f32 %v357_v59, %v341_v36 }
  0x37   : > { %v304_v40 = vadd.f32 %v1572_v52, %v296_v23  ;;  %v1328_v23 = vunpack.c.h.bf16 %v1343_v51 }
  0x38   : > { %857 = vrot.lane.b32.xlu1 %v845_v42, %s1425_s8  ;;  %834 = vrot.lane.b32.xlu0 %v832_v34, %s1425_s8  ;;  %v305_v34 = vadd.f32 %v1307_v38, %v297_v26  ;;  %v329_v42 = vadd.f32 %v1689_v8, %v322_v31  ;;  %v1800_v24 = vadd.f32 %v389_v4, %v373_v21 }
  0x39   : > { %v299_v4 = vadd.f32 %v1694_v11, %v1689_v8 }
  0x3a   : > { %v1728_v38 = vadd.f32 %v1323_v39, %v305_v34  ;;  %v1736_v63 = vadd.f32 %v1694_v11, %v329_v42  ;;  %v1296_v42 = vunpack.c.h.bf16 %v1677_v60 }
  0x3c   : > { %1004 = vrot.lane.b32.xlu1 %v992_v50, %s1425_s8  ;;  %981 = vrot.lane.b32.xlu0 %v979_v47, %s1425_s8  ;;  %v1726_v50 = vadd.f32 %v422_v35, %v360_v15  ;;  %v918_v47 = vrot.slane %v1710_v33, 1  ;;  %v893_v39 = vrot.slane %v1728_v38, 1  ;;  %v821_v7 = vmax.f32 %v1728_v38, %v1715_v41  ;;  %v1339_v35 = vld [vmem:[%s1508_s24 + $0x58] sm:$0xff]  }
  0x3d   : > { %v942_v19 = vrot.slane %v1736_v63, 1  ;;  %v1311_v17 = vunpack.c.l.bf16 %v1339_v35 }
  0x3e   : > { %459 = vst.msk [vmem:[#allocation2 + $0x31] sm:$0x7f] %vm453_vm2, %v1726_v50  ;;  %v963_v9 = vrot.slane %v1726_v50, 1  ;;  %v1754_v13 = vmax.f32 %v1736_v63, %v1726_v50  ;;  %v1768_v26 = vmax.f32 %v1715_v41, %v893_v39 }
  0x3f   : > { %v1773_v31 = vmax.f32 %v1726_v50, %v942_v19  ;;  %v1818_v19 = vadd.f32 %v1581_v58, %v304_v40  ;;  %v307_v21 = vadd.f32 %v1311_v17, %v299_v4  ;;  %v327_v4 = vadd.f32 %v1579_v57, %v320_v53 }
  0x40   : > { %1059 = vrot.lane.b32.xlu1 %v1047_v54, %s1425_s8  ;;  %1036 = vrot.lane.b32.xlu0 %v1034_v43, %s1425_s8  ;;  %v1757_v43 = vmax.f32 %v1722_v44, %v822_v1  ;;  %v910_v54 = vmax.f32 %v1710_v33, %v894_v45  ;;  %v1785_v46 = vmax.f32 %v1768_v26, %v917_v2  ;;  %v1327_v45 = vunpack.c.l.bf16 %v1343_v51 }
  0x41   : > { %v1789_v59 = vmax.f32 %v1773_v31, %v963_v9  ;;  %v392_v1 = vrot.slane %v1311_v17, 1  ;;  %v827_v53 = vmax.f32 %v1682_v5, %v1611_v10 }
  0x42   : > { %v849_v27 = vmax.f32 %v1757_v43, %v1754_v13  ;;  %v934_v29 = vmax.f32 %v910_v54, %v918_v47  ;;  %v1045_v32 = vmax.f32 %v1732_v55, %v910_v54  ;;  %v323_v2 = vadd.f32 %v1327_v45, %v1311_v17 }
  0x43   : > { %v344_v39 = vadd.f32 %v1327_v45, %v1694_v11  ;;  %v416_v9 = vadd.f32 %v1327_v45, %v1296_v42  ;;  %v1312_v54 = vunpack.c.h.bf16 %v1339_v35  ;;  %v1829_v11 = vadd.f32 %v1327_v45, %v307_v21 }
  0x44   : > { %472 = vrot.lane.b32.xlu1 %v1682_v5, %s1417_s25  ;;  %470 = vrot.lane.b32.xlu0 %v1589_v62, %s1417_s25  ;;  %v990_v36 = vmax.f32 %v1750_v12, %v934_v29  ;;  %v1793_v34 = vmax.f32 %v1045_v32, %v1773_v31  ;;  %v1280_v62 = vunpack.c.h.bf16 %v1671_v48  ;;  %v1812_v48 = vadd.f32 %v388_v56, %v372_v18 }
  0x45   : > { %v376_v25 = vadd.f32 %v360_v15, %v344_v39  ;;  %v423_v29 = vadd.f32 %v416_v9, %v392_v1  ;;  %v345_v32 = vadd.f32 %v1328_v23, %v1296_v42  ;;  %v393_v35 = vrot.slane %v1312_v54, 1 }
  0x46   : > { %v1804_v47 = vmax.f32 %v990_v36, %v1789_v59  ;;  %v361_v60 = vrot.slane %v1280_v62, 1  ;;  %v330_v56 = vadd.f32 %v1280_v62, %v323_v2  ;;  %v895_v15 = vrot.slane %v1829_v11, 1 }
  0x47   : > { %v1835_v36 = vadd.f32 %v392_v1, %v376_v25  ;;  %v939_v2 = vrot.slane %v1682_v5, 1 }
  0x48   : > { %508 = vrot.lane.b32.xlu1 %v1611_v10, %s1419_s27  ;;  %506 = vrot.lane.b32.xlu0 %v1538_v37, %s1419_s27  ;;  %v300_v37 = vadd.f32 %v1296_v42, %v1280_v62  ;;  %v1833_v51 = vadd.f32 %v1296_v42, %v330_v56  ;;  %v1837_v8 = vadd.f32 %v423_v29, %v361_v60  ;;  %v892_v56 = vrot.slane %v1818_v19, 1 }
  0x49   : > { %v377_v40 = vadd.f32 %v361_v60, %v345_v32  ;;  %v823_v17 = vmax.f32 %v1829_v11, %v1835_v36  ;;  %v919_v58 = vrot.slane %v1835_v36, 1  ;;  %v911_v60 = vmax.f32 %v1835_v36, %v895_v15 }
  0x4a   : > { %v308_v18 = vadd.f32 %v1312_v54, %v300_v37  ;;  %460 = vst.msk [vmem:[#allocation2 + $0x39] sm:$0x7f] %vm453_vm2, %v1837_v8  ;;  %v1848_v52 = vmax.f32 %v1833_v51, %v1837_v8  ;;  %v943_v42 = vrot.slane %v1833_v51, 1  ;;  %v964_v1 = vrot.slane %v1837_v8, 1 }
  0x4b   : > { %v1856_v6 = vadd.f32 %v393_v35, %v377_v40  ;;  %v1864_v39 = vmax.f32 %v1754_v13, %v823_v17  ;;  %v935_v54 = vmax.f32 %v911_v60, %v919_v58  ;;  %v891_v32 = vrot.slane %v1821_v49, 1 }
  0x4c   : > { %547 = vrot.lane.b32.xlu1 %v1800_v24, %s1418_s26  ;;  %545 = vrot.lane.b32.xlu0 %v1812_v48, %s1418_s26  ;;  %v1840_v62 = vadd.f32 %v1328_v23, %v308_v18  ;;  %v1867_v9 = vmax.f32 %v1837_v8, %v943_v42  ;;  %v1046_v23 = vmax.f32 %v1773_v31, %v911_v60  ;;  %v916_v58 = vrot.slane %v1800_v24, 1 }
  0x4d   : > { %v850_v57 = vmax.f32 %v1864_v39, %v1848_v52  ;;  %v920_v29 = vrot.slane %v1856_v6, 1  ;;  %v991_v31 = vmax.f32 %v1789_v59, %v935_v54  ;;  %v334_v17 = vadd.f32 %v1586_v61, %v327_v4 }
  0x4e   : > { %v896_v45 = vrot.slane %v1840_v62, 1  ;;  %v824_v21 = vmax.f32 %v1840_v62, %v1856_v6  ;;  %v1879_v25 = vmax.f32 %v1867_v9, %v964_v1  ;;  %v1892_v18 = vmax.f32 %v1046_v23, %v1867_v9 }
  0x4f   : > { %v960_v59 = vrot.slane %v1611_v10, 1  ;;  %v819_v60 = vmax.f32 %v1821_v49, %v1812_v48  ;;  %v953_v1 = vmax.f32 %v1611_v10, %v939_v2  ;;  %v908_v61 = vmax.f32 %v1800_v24, %v892_v56 }
  0x50   : > { %588 = vrot.lane.b32.xlu1 %v1818_v19, %s1420_s28  ;;  %586 = vrot.lane.b32.xlu0 %v1821_v49, %s1420_s28  ;;  %v1873_v37 = vmax.f32 %v1856_v6, %v896_v45  ;;  %v1889_v35 = vmax.f32 %v1848_v52, %v824_v21  ;;  %v1905_v42 = vmax.f32 %v991_v31, %v1879_v25  ;;  %v940_v4 = vrot.slane %v334_v17, 1 }
  0x51   : > { %v820_v45 = vmax.f32 %v1818_v19, %v1800_v24  ;;  %v907_v21 = vmax.f32 %v1812_v48, %v891_v32  ;;  %v915_v19 = vrot.slane %v1812_v48, 1  ;;  %v828_v49 = vmax.f32 %v334_v17, %v1626_v16 }
  0x52   : > { %v1897_v15 = vmax.f32 %v1873_v37, %v920_v29  ;;  %v840_v2 = vmax.f32 %v1653_v28, %v819_v60  ;;  %v974_v29 = vmax.f32 %v953_v1, %v960_v59  ;;  %v932_v31 = vmax.f32 %v908_v61, %v916_v58 }
  0x53   : > { %v841_v23 = vmax.f32 %v827_v53, %v820_v45  ;;  %v954_v40 = vmax.f32 %v1626_v16, %v940_v4  ;;  %v931_v56 = vmax.f32 %v907_v21, %v915_v19  ;;  %v1043_v45 = vmax.f32 %v953_v1, %v908_v61 }
  0x54   : > { %621 = vrot.lane.b32.xlu1 %v1800_v24, %s1421_s29  ;;  %619 = vrot.lane.b32.xlu0 %v1812_v48, %s1421_s29  ;;  %v961_v24 = vrot.slane %v1626_v16, 1  ;;  %v846_v54 = vmax.f32 %v840_v2, %v827_v53  ;;  %v988_v48 = vmax.f32 %v974_v29, %v932_v31  ;;  %v1042_v60 = vmax.f32 %v1631_v20, %v907_v21 }
  0x55   : > { %v847_v32 = vmax.f32 %v841_v23, %v828_v49  ;;  %v987_v59 = vmax.f32 %v1656_v30, %v931_v56  ;;  %v1049_v53 = vmax.f32 %v1043_v45, %v954_v40  ;;  %v1427_v31 = vmov 0  }
  0x56   : > { %v975_v28 = vmax.f32 %v954_v40, %v961_v24  ;;  %v1048_v4 = vmax.f32 %v1042_v60, %v953_v1  ;;  %1398 = vset.pattern.permute.xlu1 %v1427_v31  ;;  %1399 = vset.pattern.permute.xlu0 %v1427_v31 }
  0x57   : > { %v993_v58 = vmax.f32 %v987_v59, %v974_v29 }
  0x58   : > { %654 = vrot.lane.b32.xlu1 %v1626_v16, %s1422_s30  ;;  %652 = vrot.lane.b32.xlu0 %v1611_v10, %s1422_s30  ;;  %v989_v20 = vmax.f32 %v975_v28, %v1785_v46 }
  0x5c   : > { %683 = vrot.lane.b32.xlu1 %v334_v17, %s1423_s6  ;;  %681 = vrot.lane.b32.xlu0 %v1682_v5, %s1423_s6  ;;  %v994_v5 = vmax.f32 %v988_v48, %v975_v28 }
  0x60   : > { %712 = vrot.lane.b32.xlu1 %v1626_v16, %s1424_s7  ;;  %710 = vrot.lane.b32.xlu0 %v1611_v10, %s1424_s7  ;;  %v842_v10 = vmax.f32 %v828_v49, %v821_v7 }
  0x64   : > { %861 = vrot.lane.b32.xlu1 %v847_v32, %s1425_s8  ;;  %859 = vrot.lane.b32.xlu0 %v846_v54, %s1425_s8 }
  0x68   : > { %1008 = vrot.lane.b32.xlu1 %v994_v5, %s1425_s8  ;;  %1006 = vrot.lane.b32.xlu0 %v993_v58, %s1425_s8 }
  0x6c   : > { %1063 = vrot.lane.b32.xlu1 %v1049_v53, %s1425_s8  ;;  %1061 = vrot.lane.b32.xlu0 %v1048_v4, %s1425_s8 }
  0x70   : > { %476 = vrot.lane.b32.xlu1 %v1696_v14, %s1417_s25  ;;  %474 = vrot.lane.b32.xlu0 %v334_v17, %s1417_s25 }
  0x74   : > { %512 = vrot.lane.b32.xlu1 %v1700_v22, %s1419_s27  ;;  %510 = vrot.lane.b32.xlu0 %v1626_v16, %s1419_s27  ;;  %v848_v16 = vmax.f32 %v842_v10, %v1722_v44 }
  0x78   : > { %551 = vrot.lane.b32.xlu1 %v1710_v33, %s1418_s26  ;;  %549 = vrot.lane.b32.xlu0 %v1715_v41, %s1418_s26 }
  0x7c   : > { %592 = vrot.lane.b32.xlu1 %v1717_v3, %s1420_s28  ;;  %590 = vrot.lane.b32.xlu0 %v1728_v38, %s1420_s28 }
  0x80   : > { %625 = vrot.lane.b32.xlu1 %v1710_v33, %s1421_s29  ;;  %623 = vrot.lane.b32.xlu0 %v1715_v41, %s1421_s29 }
  0x84   : > { %658 = vrot.lane.b32.xlu1 %v1726_v50, %s1422_s30  ;;  %656 = vrot.lane.b32.xlu0 %v1700_v22, %s1422_s30 }
  0x88   : > { %687 = vrot.lane.b32.xlu1 %v1736_v63, %s1423_s6  ;;  %685 = vrot.lane.b32.xlu0 %v1696_v14, %s1423_s6  ;;  %v995_v14 = vmax.f32 %v989_v20, %v1750_v12 }
  0x8c   : > { %716 = vrot.lane.b32.xlu1 %v1726_v50, %s1424_s7  ;;  %714 = vrot.lane.b32.xlu0 %v1700_v22, %s1424_s7  ;;  %v1044_v22 = vmax.f32 %v954_v40, %v1768_v26 }
  0x8e   : > { %v469_v30 = vpop.permute.xlu0 %468  ;;  %v542_v33 = vpop.permute.xlu1 %541  ;;  %v1050_v44 = vmax.f32 %v1044_v22, %v1732_v55 }
  0x8f   : > { %490 = vst.msk [vmem:[#allocation2 + $0x8] sm:$0xff] %vm489_vm3, %v469_v30 }
  0x90   : > { %566 = vst.msk [vmem:[#allocation2 + $0x1] sm:$0x7f] %vm565_vm4, %v542_v33  ;;  %865 = vrot.lane.b32.xlu1 %v849_v27, %s1425_s8  ;;  %863 = vrot.lane.b32.xlu0 %v848_v16, %s1425_s8 }
  0x92   : > { %v505_v41 = vpop.permute.xlu0 %504  ;;  %v544_v3 = vpop.permute.xlu1 %543 }
  0x93   : > { %526 = vst.msk [vmem:[#allocation2 + $0x8] sm:$0x7f] %vm525_vm5, %v505_v41 }
  0x94   : > { %567 = vst.msk [vmem:[#allocation2 + $0x9] sm:$0x7f] %vm565_vm4, %v544_v3  ;;  %1012 = vrot.lane.b32.xlu1 %v1804_v47, %s1425_s8  ;;  %1010 = vrot.lane.b32.xlu0 %v995_v14, %s1425_s8 }
  0x96   : > { %v585_v38 = vpop.permute.xlu1 %584  ;;  %v583_v7 = vpop.permute.xlu0 %582 }
  0x97   : > { %608 = vst.msk [vmem:[#allocation2 + $0x8] sm:$0xff] %vm606_vm6, %v585_v38  ;;  %607 = vst.msk [vmem:[#allocation2] sm:$0xff] %vm606_vm6, %v583_v7 }
  0x98   : > { %1067 = vrot.lane.b32.xlu1 %v1793_v34, %s1425_s8  ;;  %1065 = vrot.lane.b32.xlu0 %v1050_v44, %s1425_s8 }
  0x9a   : > { %v618_v12 = vpop.permute.xlu1 %617  ;;  %v616_v13 = vpop.permute.xlu0 %615 }
  0x9b   : > { %641 = vst.msk [vmem:[#allocation2 + $0x8] sm:$0x7f] %vm639_vm7, %v618_v12  ;;  %640 = vst.msk [vmem:[#allocation2] sm:$0x7f] %vm639_vm7, %v616_v13 }
  0x9c   : > { %514 = vrot.lane.b32.xlu1 %v1726_v50, %s1419_s27  ;;  %478 = vrot.lane.b32.xlu0 %v1736_v63, %s1417_s25 }
  0x9e   : > { %v651_v55 = vpop.permute.xlu1 %650  ;;  %v649_v43 = vpop.permute.xlu0 %648 }
  0x9f   : > { %671 = vst.msk [vmem:[#allocation2 + $0x9] sm:$0x7f] %vm669_vm8, %v651_v55  ;;  %670 = vst.msk [vmem:[#allocation2 + $0x1] sm:$0x7f] %vm669_vm8, %v649_v43 }
  0xa0   : > { %480 = vrot.lane.b32.xlu1 %v1833_v51, %s1417_s25  ;;  %553 = vrot.lane.b32.xlu0 %v1835_v36, %s1418_s26 }
  0xa2   : > { %v680_v26 = vpop.permute.xlu1 %679  ;;  %v678_v27 = vpop.permute.xlu0 %677 }
  0xa3   : > { %700 = vst.msk [vmem:[#allocation2 + $0x8] sm:$0xff] %vm698_vm9, %v680_v26  ;;  %699 = vst.msk [vmem:[#allocation2] sm:$0xff] %vm698_vm9, %v678_v27 }
  0xa4   : > { %516 = vrot.lane.b32.xlu1 %v1837_v8, %s1419_s27  ;;  %594 = vrot.lane.b32.xlu0 %v1829_v11, %s1420_s28 }
  0xa6   : > { %v709_v50 = vpop.permute.xlu1 %708  ;;  %v707_v63 = vpop.permute.xlu0 %706 }
  0xa7   : > { %729 = vst.msk [vmem:[#allocation2 + $0x8] sm:$0x7f] %vm727_vm10, %v709_v50  ;;  %728 = vst.msk [vmem:[#allocation2] sm:$0x7f] %vm727_vm10, %v707_v63 }
  0xa8   : > { %555 = vrot.lane.b32.xlu1 %v1856_v6, %s1418_s26  ;;  %627 = vrot.lane.b32.xlu0 %v1835_v36, %s1421_s29 }
  0xaa   : > { %v858_v46 = vpop.permute.xlu1 %857  ;;  %v835_v34 = vpop.permute.xlu0 %834 }
  0xab   : > { %876 = vst.msk [vmem:[#allocation3 + $0x8] sm:$0x1] %vm837_vm11, %v858_v46  ;;  %838 = vst.msk [vmem:[#allocation3] sm:$0x1] %vm837_vm11, %v835_v34 }
  0xac   : > { %596 = vrot.lane.b32.xlu1 %v1840_v62, %s1420_s28  ;;  %660 = vrot.lane.b32.xlu0 %v1837_v8, %s1422_s30 }
  0xae   : > { %v1005_v47 = vpop.permute.xlu1 %1004  ;;  %v982_v11 = vpop.permute.xlu0 %981  ;;  %v735_v40 = vld [vmem:[#allocation2] sm:$0xff]  ;;  %v736_v17 = vld [vmem:[#allocation2 + $0x8] sm:$0xff] }
  0xaf   : > { %1022 = vst.msk [vmem:[#allocation3 + $0x9] sm:$0x3f] %vm984_vm12, %v1005_v47  ;;  %985 = vst.msk [vmem:[#allocation3 + $0x1] sm:$0x3f] %vm984_vm12, %v982_v11  ;;  %v743_v36 = vpack.c.bf16 %v736_v17, %v735_v40 }
  0xb0   : > { %629 = vrot.lane.b32.xlu1 %v1856_v6, %s1421_s29  ;;  %689 = vrot.lane.b32.xlu0 %v1833_v51, %s1423_s6 }
  0xb1   : > { %v758_v62 = vsel %vm431_vm1, %v743_v36, 0 }
  0xb2   : > { %v1060_v1 = vpop.permute.xlu1 %1059  ;;  %1355 = vmatpush3.bf16.xpose.msra.mxu0 %v758_v62  ;;  %v1037_v54 = vpop.permute.xlu0 %1036 }
  0xb3   : > { %1077 = vst.msk [vmem:[#allocation3 + $0x9] sm:$0x40] %vm1039_vm13, %v1060_v1  ;;  %1040 = vst.msk [vmem:[#allocation3 + $0x1] sm:$0x40] %vm1039_vm13, %v1037_v54  ;;  %1356 = vmatprep.subr.bf16.mxu0 %v1416_v0 }
  0xb4   : > { %867 = vrot.lane.b32.xlu1 %v850_v57, %s1425_s8  ;;  %718 = vrot.lane.b32.xlu0 %v1837_v8, %s1424_s7 }
  0xb6   : > { %v473_v51 = vpop.permute.xlu1 %472  ;;  %v471_v6 = vpop.permute.xlu0 %470 }
  0xb7   : > { %492 = vst.msk [vmem:[#allocation2 + $0x18] sm:$0xff] %vm489_vm3, %v473_v51  ;;  %491 = vst.msk [vmem:[#allocation2 + $0x10] sm:$0xff] %vm489_vm3, %v471_v6 }
  0xb8   : > { %1014 = vrot.lane.b32.xlu1 %v1905_v42, %s1425_s8  ;;  %884 = vrot.lane.b32.xlu0 %v1889_v35, %s1425_s8  ;;  %v2161_v42 = vmax.f32 %v1879_v25, %v1897_v15  ;;  %v748_v25 = vld [vmem:[%s2156_s2] sm:$0xff] }
  0xb9   : > { %v1102_v15 = vld [vmem:[%s2158_s4] sm:$0xff] }
  0xba   : > { %v509_v52 = vpop.permute.xlu1 %508  ;;  %v507_v39 = vpop.permute.xlu0 %506  ;;  %v1089_v8 = vld [vmem:[#allocation3] sm:$0xff]  ;;  %v1090_v57 = vld [vmem:[#allocation3 + $0x8] sm:$0xff] }
  0xbb   : > { %528 = vst.msk [vmem:[#allocation2 + $0x18] sm:$0x7f] %vm525_vm5, %v509_v52  ;;  %527 = vst.msk [vmem:[#allocation2 + $0x10] sm:$0x7f] %vm525_vm5, %v507_v39  ;;  %v1097_v61 = vpack.c.bf16 %v1090_v57, %v1089_v8 }
  0xbc   : > { %1069 = vrot.lane.b32.xlu1 %v1892_v18, %s1425_s8  ;;  %1030 = vrot.lane.b32.xlu0 %v2161_v42, %s1425_s8  ;;  %v2162_v18 = vmax.f32 %v1867_v9, %v1873_v37 }
  0xbd   : > { %v1113_v35 = vsel %vm1108_vm15, %v1097_v61, 0 }
  0xbe   : > { %v548_v21 = vpop.permute.xlu1 %547  ;;  %1367 = vmatpush3.bf16.xpose.msra.mxu1 %v1113_v35  ;;  %v546_v19 = vpop.permute.xlu0 %545 }
  0xbf   : > { %569 = vst.msk [vmem:[#allocation2 + $0x19] sm:$0x7f] %vm565_vm4, %v548_v21  ;;  %568 = vst.msk [vmem:[#allocation2 + $0x11] sm:$0x7f] %vm565_vm4, %v546_v19  ;;  %1368 = vmatprep.subr.bf16.mxu1 %v1416_v0 }
  0xc0   : > { %1085 = vrot.lane.b32.xlu0 %v2162_v18, %s1425_s8  ;;  %751 = vperm.xlu1 %1398, %v748_v25  }
  0xc2   : > { %v589_v49 = vpop.permute.xlu1 %588  ;;  %v587_v23 = vpop.permute.xlu0 %586 }
  0xc3   : > { %610 = vst.msk [vmem:[#allocation2 + $0x18] sm:$0xff] %vm606_vm6, %v589_v49  ;;  %609 = vst.msk [vmem:[#allocation2 + $0x10] sm:$0xff] %vm606_vm6, %v587_v23 }
  0xc4   : > { %1105 = vperm.xlu0 %1399, %v1102_v15  }
  0xc6   : > { %v622_v2 = vpop.permute.xlu1 %621  ;;  %v620_v29 = vpop.permute.xlu0 %619 }
  0xc7   : > { %643 = vst.msk [vmem:[#allocation2 + $0x18] sm:$0x7f] %vm639_vm7, %v622_v2  ;;  %642 = vst.msk [vmem:[#allocation2 + $0x10] sm:$0x7f] %vm639_vm7, %v620_v29 }
  0xca   : > { %v655_v9 = vpop.permute.xlu1 %654  ;;  %v653_v37 = vpop.permute.xlu0 %652 }
  0xcb   : > { %673 = vst.msk [vmem:[#allocation2 + $0x19] sm:$0x7f] %vm669_vm8, %v655_v9  ;;  %672 = vst.msk [vmem:[#allocation2 + $0x11] sm:$0x7f] %vm669_vm8, %v653_v37 }
  0xce   : > { %v684_v24 = vpop.permute.xlu1 %683  ;;  %v682_v56 = vpop.permute.xlu0 %681 }
  0xcf   : > { %702 = vst.msk [vmem:[#allocation2 + $0x18] sm:$0xff] %vm698_vm9, %v684_v24  ;;  %701 = vst.msk [vmem:[#allocation2 + $0x10] sm:$0xff] %vm698_vm9, %v682_v56 }
  0xd2   : > { %v713_v32 = vpop.permute.xlu1 %712  ;;  %v711_v28 = vpop.permute.xlu0 %710 }
  0xd3   : > { %731 = vst.msk [vmem:[#allocation2 + $0x18] sm:$0x7f] %vm727_vm10, %v713_v32  ;;  %730 = vst.msk [vmem:[#allocation2 + $0x10] sm:$0x7f] %vm727_vm10, %v711_v28 }
  0xd6   : > { %v862_v48 = vpop.permute.xlu1 %861  ;;  %v860_v59 = vpop.permute.xlu0 %859 }
  0xd7   : > { %878 = vst.msk [vmem:[#allocation3 + $0x18] sm:$0x1] %vm837_vm11, %v862_v48  ;;  %877 = vst.msk [vmem:[#allocation3 + $0x10] sm:$0x1] %vm837_vm11, %v860_v59 }
  0xda   : > { %v1009_v45 = vpop.permute.xlu1 %1008  ;;  %v1007_v5 = vpop.permute.xlu0 %1006  ;;  %v737_v58 = vld [vmem:[#allocation2 + $0x10] sm:$0xff]  ;;  %v738_v60 = vld [vmem:[#allocation2 + $0x18] sm:$0xff] }
  0xdb   : > { %1024 = vst.msk [vmem:[#allocation3 + $0x19] sm:$0x3f] %vm984_vm12, %v1009_v45  ;;  %1023 = vst.msk [vmem:[#allocation3 + $0x11] sm:$0x3f] %vm984_vm12, %v1007_v5  ;;  %v744_v53 = vpack.c.bf16 %v738_v60, %v737_v58  ;;  %v747_v5 = vld [vmem:[%s2155_s1] sm:$0xf] }
  0xdd   : > { %v761_v4 = vsel %vm431_vm1, %v744_v53, 0 }
  0xde   : > { %v1064_v10 = vpop.permute.xlu1 %1063  ;;  %1357 = vmatpush3.bf16.xpose.msra.mxu0 %v761_v4  ;;  %v1062_v16 = vpop.permute.xlu0 %1061 }
  0xdf   : > { %1079 = vst.msk [vmem:[#allocation3 + $0x19] sm:$0x40] %vm1039_vm13, %v1064_v10  ;;  %1078 = vst.msk [vmem:[#allocation3 + $0x11] sm:$0x40] %vm1039_vm13, %v1062_v16  ;;  %1358 = vmatprep.subr.bf16.mxu0 %v1416_v0  ;;  %v1101_v10 = vld [vmem:[%s2157_s3] sm:$0xf] }
  0xe2   : > { %v477_v20 = vpop.permute.xlu1 %476  ;;  %v475_v30 = vpop.permute.xlu0 %474 }
  0xe3   : > { %494 = vst.msk [vmem:[#allocation2 + $0x28] sm:$0xff] %vm489_vm3, %v477_v20  ;;  %493 = vst.msk [vmem:[#allocation2 + $0x20] sm:$0xff] %vm489_vm3, %v475_v30 }
  0xe6   : > { %v513_v33 = vpop.permute.xlu1 %512  ;;  %v511_v14 = vpop.permute.xlu0 %510  ;;  %v1091_v22 = vld [vmem:[#allocation3 + $0x10] sm:$0xff]  ;;  %v1092_v41 = vld [vmem:[#allocation3 + $0x18] sm:$0xff] }
  0xe7   : > { %530 = vst.msk [vmem:[#allocation2 + $0x28] sm:$0x7f] %vm525_vm5, %v513_v33  ;;  %529 = vst.msk [vmem:[#allocation2 + $0x20] sm:$0x7f] %vm525_vm5, %v511_v14  ;;  %v1098_v3 = vpack.c.bf16 %v1092_v41, %v1091_v22 }
  0xe9   : > { %v1116_v44 = vsel %vm1108_vm15, %v1098_v3, 0 }
  0xea   : > { %v552_v38 = vpop.permute.xlu1 %551  ;;  %1369 = vmatpush3.bf16.xpose.msra.mxu1 %v1116_v44  ;;  %v550_v7 = vpop.permute.xlu0 %549 }
  0xeb   : > { %571 = vst.msk [vmem:[#allocation2 + $0x29] sm:$0x7f] %vm565_vm4, %v552_v38  ;;  %570 = vst.msk [vmem:[#allocation2 + $0x21] sm:$0x7f] %vm565_vm4, %v550_v7  ;;  %1370 = vmatprep.subr.bf16.mxu1 %v1416_v0 }
  0xee   : > { %v593_v12 = vpop.permute.xlu1 %592  ;;  %v591_v13 = vpop.permute.xlu0 %590 }
  0xef   : > { %612 = vst.msk [vmem:[#allocation2 + $0x28] sm:$0xff] %vm606_vm6, %v593_v12  ;;  %611 = vst.msk [vmem:[#allocation2 + $0x20] sm:$0xff] %vm606_vm6, %v591_v13 }
  0xf2   : > { %v626_v55 = vpop.permute.xlu1 %625  ;;  %v624_v43 = vpop.permute.xlu0 %623 }
  0xf3   : > { %645 = vst.msk [vmem:[#allocation2 + $0x28] sm:$0x7f] %vm639_vm7, %v626_v55  ;;  %644 = vst.msk [vmem:[#allocation2 + $0x20] sm:$0x7f] %vm639_vm7, %v624_v43 }
  0xf6   : > { %v659_v26 = vpop.permute.xlu1 %658  ;;  %v657_v27 = vpop.permute.xlu0 %656 }
  0xf7   : > { %675 = vst.msk [vmem:[#allocation2 + $0x29] sm:$0x7f] %vm669_vm8, %v659_v26  ;;  %674 = vst.msk [vmem:[#allocation2 + $0x21] sm:$0x7f] %vm669_vm8, %v657_v27 }
  0xfa   : > { %v688_v50 = vpop.permute.xlu1 %687  ;;  %v686_v63 = vpop.permute.xlu0 %685 }
  0xfb   : > { %704 = vst.msk [vmem:[#allocation2 + $0x28] sm:$0xff] %vm698_vm9, %v688_v50  ;;  %703 = vst.msk [vmem:[#allocation2 + $0x20] sm:$0xff] %vm698_vm9, %v686_v63 }
  0xfe   : > { %v717_v46 = vpop.permute.xlu1 %716  ;;  %v715_v34 = vpop.permute.xlu0 %714 }
  0xff   : > { %733 = vst.msk [vmem:[#allocation2 + $0x28] sm:$0x7f] %vm727_vm10, %v717_v46  ;;  %732 = vst.msk [vmem:[#allocation2 + $0x20] sm:$0x7f] %vm727_vm10, %v715_v34 }
 0x102   : > { %v866_v47 = vpop.permute.xlu1 %865  ;;  %v864_v11 = vpop.permute.xlu0 %863 }
 0x103   : > { %880 = vst.msk [vmem:[#allocation3 + $0x28] sm:$0x1] %vm837_vm11, %v866_v47  ;;  %879 = vst.msk [vmem:[#allocation3 + $0x20] sm:$0x1] %vm837_vm11, %v864_v11 }
 0x106   : > { %v1013_v40 = vpop.permute.xlu1 %1012  ;;  %v1011_v17 = vpop.permute.xlu0 %1010  ;;  %v739_v36 = vld [vmem:[#allocation2 + $0x20] sm:$0xff]  ;;  %v740_v62 = vld [vmem:[#allocation2 + $0x28] sm:$0xff] }
 0x107   : > { %1026 = vst.msk [vmem:[#allocation3 + $0x29] sm:$0x3f] %vm984_vm12, %v1013_v40  ;;  %1025 = vst.msk [vmem:[#allocation3 + $0x21] sm:$0x3f] %vm984_vm12, %v1011_v17  ;;  %v745_v1 = vpack.c.bf16 %v740_v62, %v739_v36 }
 0x109   : > { %v764_v54 = vsel %vm431_vm1, %v745_v1, 0 }
 0x10a   : > { %v1068_v51 = vpop.permute.xlu1 %1067  ;;  %1359 = vmatpush3.bf16.xpose.msra.mxu0 %v764_v54  ;;  %v1066_v6 = vpop.permute.xlu0 %1065 }
 0x10b   : > { %1081 = vst.msk [vmem:[#allocation3 + $0x29] sm:$0x40] %vm1039_vm13, %v1068_v51  ;;  %1080 = vst.msk [vmem:[#allocation3 + $0x21] sm:$0x40] %vm1039_vm13, %v1066_v6  ;;  %1360 = vmatprep.subr.bf16.mxu0 %v1416_v0 }
 0x10e   : > { %v515_v52 = vpop.permute.xlu1 %514  ;;  %v479_v39 = vpop.permute.xlu0 %478 }
 0x10f   : > { %495 = vst.msk [vmem:[#allocation2 + $0x30] sm:$0xff] %vm489_vm3, %v479_v39 }
 0x110   : > { %531 = vst.msk [vmem:[#allocation2 + $0x30] sm:$0x7f] %vm525_vm5, %v515_v52 }
 0x112   : > { %v481_v8 = vpop.permute.xlu1 %480  ;;  %v554_v57 = vpop.permute.xlu0 %553  ;;  %v1093_v61 = vld [vmem:[#allocation3 + $0x20] sm:$0xff]  ;;  %v1094_v42 = vld [vmem:[#allocation3 + $0x28] sm:$0xff] }
 0x113   : > { %496 = vst.msk [vmem:[#allocation2 + $0x38] sm:$0xff] %vm489_vm3, %v481_v8  ;;  %v1099_v35 = vpack.c.bf16 %v1094_v42, %v1093_v61 }
 0x114   : > { %572 = vst.msk [vmem:[#allocation2 + $0x31] sm:$0x7f] %vm565_vm4, %v554_v57 }
 0x115   : > { %v1119_v21 = vsel %vm1108_vm15, %v1099_v35, 0 }
 0x116   : > { %v517_v19 = vpop.permute.xlu1 %516  ;;  %1371 = vmatpush3.bf16.xpose.msra.mxu1 %v1119_v21  ;;  %v595_v18 = vpop.permute.xlu0 %594 }
 0x117   : > { %532 = vst.msk [vmem:[#allocation2 + $0x38] sm:$0x7f] %vm525_vm5, %v517_v19  ;;  %1372 = vmatprep.subr.bf16.mxu1 %v1416_v0 }
 0x118   : > { %613 = vst.msk [vmem:[#allocation2 + $0x30] sm:$0xff] %vm606_vm6, %v595_v18 }
 0x11a   : > { %v556_v49 = vpop.permute.xlu1 %555  ;;  %v628_v23 = vpop.permute.xlu0 %627 }
 0x11b   : > { %573 = vst.msk [vmem:[#allocation2 + $0x39] sm:$0x7f] %vm565_vm4, %v556_v49 }
 0x11c   : > { %646 = vst.msk [vmem:[#allocation2 + $0x30] sm:$0x7f] %vm639_vm7, %v628_v23 }
 0x11e   : > { %v597_v25 = vpop.permute.xlu1 %596  ;;  %v661_v15 = vpop.permute.xlu0 %660 }
 0x11f   : > { %614 = vst.msk [vmem:[#allocation2 + $0x38] sm:$0xff] %vm606_vm6, %v597_v25 }
 0x120   : > { %676 = vst.msk [vmem:[#allocation2 + $0x31] sm:$0x7f] %vm669_vm8, %v661_v15 }
 0x122   : > { %v630_v2 = vpop.permute.xlu1 %629  ;;  %v690_v29 = vpop.permute.xlu0 %689 }
 0x123   : > { %647 = vst.msk [vmem:[#allocation2 + $0x38] sm:$0x7f] %vm639_vm7, %v630_v2 }
 0x124   : > { %705 = vst.msk [vmem:[#allocation2 + $0x30] sm:$0xff] %vm698_vm9, %v690_v29 }
 0x126   : > { %v868_v31 = vpop.permute.xlu1 %867  ;;  %v719_v0 = vpop.permute.xlu0 %718 }
 0x127   : > { %881 = vst.msk [vmem:[#allocation3 + $0x30] sm:$0x1] %vm837_vm11, %v868_v31 }
 0x128   : > { %734 = vst.msk [vmem:[#allocation2 + $0x30] sm:$0x7f] %vm727_vm10, %v719_v0 }
 0x12a   : > { %v1015_v9 = vpop.permute.xlu1 %1014  ;;  %v885_v37 = vpop.permute.xlu0 %884  ;;  %v742_v28 = vld [vmem:[#allocation2 + $0x38] sm:$0xff] }
 0x12b   : > { %1027 = vst.msk [vmem:[#allocation3 + $0x31] sm:$0x3f] %vm984_vm12, %v1015_v9 }
 0x12c   : > { %888 = vst.msk [vmem:[#allocation3 + $0x38] sm:$0x1] %vm837_vm11, %v885_v37 }
 0x12e   : > { %v1070_v24 = vpop.permute.xlu1 %1069  ;;  %v1031_v56 = vpop.permute.xlu0 %1030 }
 0x12f   : > { %v741_v32 = vld [vmem:[#allocation2 + $0x30] sm:$0xff]  ;;  %1082 = vst.msk [vmem:[#allocation3 + $0x31] sm:$0x40] %vm1039_vm13, %v1070_v24 }
 0x130   : > { %1033 = vst.msk [vmem:[#allocation3 + $0x39] sm:$0x3f] %vm984_vm12, %v1031_v56  ;;  %v746_v48 = vpack.c.bf16 %v742_v28, %v741_v32 }
 0x132   : > { %v767_v59 = vsel %vm431_vm1, %v746_v48, 0  ;;  %v1086_v45 = vpop.permute.xlu0 %1085 }
 0x133   : > { %1361 = vmatpush3.bf16.xpose.msra.mxu0 %v767_v59  ;;  %1088 = vst.msk [vmem:[#allocation3 + $0x39] sm:$0x40] %vm1039_vm13, %v1086_v45 }
 0x136   : > { %v1095_v58 = vld [vmem:[#allocation3 + $0x30] sm:$0xff] }
 0x13a   : > { %1363 = vmatmul.mubr.msk.bf16.vlgmr.msra.gmra.mrb[0].mxu0 %vm431_vm1, %v747_v5  ;;  %v1096_v60 = vld [vmem:[#allocation3 + $0x38] sm:$0xff] }
 0x13b   : > { %v1100_v53 = vpack.c.bf16 %v1096_v60, %v1095_v58 }
 0x13d   : > { %v1122_v4 = vsel %vm1108_vm15, %v1100_v53, 0 }
 0x13e   : > { %1373 = vmatpush3.bf16.xpose.msra.mxu1 %v1122_v4 }
 0x13f   : > { %v752_v16 = vpop.permute.xlu1 %751 }
 0x143   : > { %v1106_v44 = vpop.permute.xlu0 %1105 }
 0x145   : > { %1375 = vmatmul.mubr.msk.bf16.vlgmr.msra.gmra.mrb[0].mxu1 %vm1108_vm15, %v1101_v10 }
 0x20d   : > { %v803_v20 = vpop.f32.mrb[0].mxu0 }
 0x20e   : > { %v804_v30 = vadd.f32 %v803_v20, %v752_v16  ;;  %v1364_v33 = vpop.f32.mrb[1].mxu0 }
 0x20f   : > { %v806_v14 = vpop.f32.mrb[2].mxu0 }
 0x210   : > { %v809_v22 = vsub.f32 0.0, %v804_v30  ;;  %v1365_v41 = vpop.f32.mrb[3].mxu0 }
 0x212   : > { %v810_v3 = vmul.f32 1.442695, %v809_v22 }
 0x214   : > { %1400 = vpow2.f32 %v810_v3 }
 0x218   : > { %v1158_v38 = vpop.f32.mrb[0].mxu1 }
 0x219   : > { %v1159_v7 = vadd.f32 %v1158_v38, %v1106_v44  ;;  %v1376_v12 = vpop.f32.mrb[1].mxu1 }
 0x21a   : > { %v1161_v13 = vpop.f32.mrb[2].mxu1 }
 0x21b   : > { %v1164_v55 = vsub.f32 0.0, %v1159_v7  ;;  %v1377_v43 = vpop.f32.mrb[3].mxu1 }
 0x21d   : > { %v1165_v27 = vmul.f32 1.442695, %v1164_v55 }
 0x21e   : > { %v1401_v26 = vpop.eup %1400 }
 0x21f   : > { %v812_v50 = vadd.f32 1.0, %v1401_v26  ;;  %1402 = vpow2.f32 %v1165_v27 }
 0x221   : > { %1404 = vrcp.f32 %v812_v50 }
 0x229   : > { %v1403_v63 = vpop.eup %1402 }
 0x22a   : > { %v1167_v34 = vadd.f32 1.0, %v1403_v63 }
 0x22b   : > { %v1405_v46 = vpop.eup %1404 }
 0x22c   : > { %v814_v47 = vmul.f32 %v1405_v46, %v804_v30  ;;  %1406 = vrcp.f32 %v1167_v34 }
 0x22e   : > { %816 = vst.msk [vmem:[%s224_s22] sm:$0xff] %vm815_vm0, %v814_v47 }
 0x236   : > { %v1407_v11 = vpop.eup %1406 }
 0x237   : > { %v1169_v40 = vmul.f32 %v1407_v11, %v1159_v7 }
 0x239   : > { %1170 = vst.msk [vmem:[%s224_s22 + $0x8] sm:$0xff] %vm815_vm0, %v1169_v40 }
 0x23a PF: > { %s15_s18 = sadd.s32 1, %s1414_s18  }
 0x23b   : > { %p12_p4 = scmp.ge.s32.totalorder %s15_s18, 4  }
 0x23d   :  { %14 = sbr.rel (!%p12_p4) target bundleno = 1 (0x1), region = 77 }

</bundles_post_ra>
